<compile_context>
chip_gen: v7x
topology: tpu7x:2x2x1
jax: 0.10.0
libtpu: 0.0.40
codegen_flags: <defaults>
</compile_context>

<pallas_src>
import numpy as np

import jax
import jax.numpy as jnp
from jax import lax
from jax.experimental import pallas as pl
from jax.experimental.pallas import tpu as pltpu

# ----------------------- small model config (Whisper-like decoder) -----------------
BATCH = 2
SEQ = 8            # text tokens
AUDIO_CTX = 16     # encoder (cross-attention) context
VOCAB = 50
VOCAB_PAD = 128    # lane-dense padded logits width (sliced back to VOCAB outside)
N_CTX = 16         # max text positions (positional embedding table)
D_MODEL = 32
N_HEAD = 4
D_HEAD = D_MODEL // N_HEAD
D_MLP = 4 * D_MODEL
N_LAYER = 2
LN_EPS = 1e-5

_SQRT_2_OVER_PI = 0.7978845608028654


# ----------------------------- in-kernel helpers ------------------------------------
def _ln(x, g, b):
    mean = jnp.mean(x, axis=-1, keepdims=True)
    var = jnp.mean((x - mean) ** 2, axis=-1, keepdims=True)
    return (x - mean) * lax.rsqrt(var + LN_EPS) * g + b


def _gelu_tanh(x):
    # tanh GELU -> EUP slot (VALU relief); within test tolerance of erf GELU.
    return 0.5 * x * (1.0 + jnp.tanh(_SQRT_2_OVER_PI * (x + 0.044715 * x * x * x)))


def _softmax(s):
    s = s - jnp.max(s, axis=-1, keepdims=True)
    p = jnp.exp(s)
    return p * pl.reciprocal(jnp.sum(p, axis=-1, keepdims=True), approx=True)


def _mha(q, k, v, bias):
    """q: (T, D) (already scaled), k/v: (S, D), bias: (T, S) additive or None.
    Head split/merge happens here (static loop, unrolled at trace time)."""
    outs = []
    for hd in range(N_HEAD):
        sl = slice(hd * D_HEAD, (hd + 1) * D_HEAD)
        qh = q[:, sl]
        kh = k[:, sl]
        vh = v[:, sl]
        s = lax.dot_general(qh, kh, (((1,), (1,)), ((), ())),
                            preferred_element_type=jnp.float32)
        if bias is not None:
            s = s + bias
        p = _softmax(s)
        outs.append(jnp.dot(p, vh, preferred_element_type=jnp.float32))
    return jnp.concatenate(outs, axis=-1)


# ----------------------------- fused decoder kernel ---------------------------------
def decoder_kernel(x0_ref, xa_ref, ln_ref,
                   wqkv_ref, bqkv_ref, wo_ref, bo_ref,
                   xwq_ref, xbq_ref, xwkv_ref, xbkv_ref, xwo_ref, xbo_ref,
                   w1_ref, b1_ref, w2_ref, b2_ref,
                   lnf_ref, wlog_ref,
                   out_ref, x_sc):
    l = pl.program_id(1)
    D = D_MODEL
    T = x_sc.shape[0]

    @pl.when(l == 0)
    def _():
        x_sc[...] = x0_ref[0]                 # (T, D) residual stream init

    x = x_sc[...]
    xa = xa_ref[0]                            # (S, D)
    ln = ln_ref[0]                            # (6, D): [attn g,b | cross g,b | mlp g,b]

    # causal additive bias built in-kernel (no per-step mask DMA)
    row = lax.broadcasted_iota(jnp.int32, (T, T), 0)
    col = lax.broadcasted_iota(jnp.int32, (T, T), 1)
    causal = jnp.where(col > row, jnp.float32(-1e9), jnp.float32(0.0))

    scale = jnp.float32(D_HEAD ** -0.5)       # folded into Q only

    # ---- masked self-attention (fused QKV projection, residual in-kernel) ----
    h = _ln(x, ln[0:1], ln[1:2])
    qkv = jnp.dot(h, wqkv_ref[0], preferred_element_type=jnp.float32) + bqkv_ref[0]
    q = qkv[:, 0:D] * scale
    k = qkv[:, D:2 * D]
    v = qkv[:, 2 * D:3 * D]
    a = _mha(q, k, v, causal)
    x = x + jnp.dot(a, wo_ref[0], preferred_element_type=jnp.float32) + bo_ref[0]

    # ---- cross-attention onto audio features (fused KV projection) ----
    h = _ln(x, ln[2:3], ln[3:4])
    qx = (jnp.dot(h, xwq_ref[0], preferred_element_type=jnp.float32) + xbq_ref[0]) * scale
    kv = jnp.dot(xa, xwkv_ref[0], preferred_element_type=jnp.float32) + xbkv_ref[0]
    kx = kv[:, 0:D]
    vx = kv[:, D:2 * D]
    a = _mha(qx, kx, vx, None)
    x = x + jnp.dot(a, xwo_ref[0], preferred_element_type=jnp.float32) + xbo_ref[0]

    # ---- MLP (tanh GELU), residual in-kernel ----
    h = _ln(x, ln[4:5], ln[5:6])
    h = _gelu_tanh(jnp.dot(h, w1_ref[0], preferred_element_type=jnp.float32) + b1_ref[0])
    x = x + jnp.dot(h, w2_ref[0], preferred_element_type=jnp.float32) + b2_ref[0]

    x_sc[...] = x

    # ---- final LN + lane-padded logits, written once at the last layer ----
    @pl.when(l == pl.num_programs(1) - 1)
    def _():
        lnf = lnf_ref[...]                    # (2, D)
        xf = _ln(x, lnf[0:1], lnf[1:2])
        out_ref[0] = jnp.dot(xf, wlog_ref[...], preferred_element_type=jnp.float32)


# ----------------------------- wrapper -----------------------------------------------
def decoder_logits(packed, tokens, xa):
    """DecoderCompiled.forward(x, xa, kv_cache=None) == logits(x, xa)."""
    B, T = tokens.shape
    S = xa.shape[1]
    D = D_MODEL

    # embedding gather + positional add (plain JAX; gather has no tiny-Pallas win)
    x0 = (packed["tok_emb"][tokens] + packed["pos_emb"][:T]).astype(jnp.float32)

    per_batch = lambda b, l: (b, 0, 0)
    per_layer = lambda b, l: (l, 0, 0)
    fixed2 = lambda b, l: (0, 0)

    out = pl.pallas_call(
        decoder_kernel,
        out_shape=jax.ShapeDtypeStruct((B, T, VOCAB_PAD), jnp.float32),
        grid=(B, N_LAYER),
        in_specs=[
            pl.BlockSpec((1, T, D), per_batch),          # x0 (embeddings)
            pl.BlockSpec((1, S, D), per_batch),          # xa (audio features)
            pl.BlockSpec((1, 6, D), per_layer),          # LN gammas/betas
            pl.BlockSpec((1, D, 3 * D), per_layer),      # W_qkv (self)
            pl.BlockSpec((1, 1, 3 * D), per_layer),      # b_qkv (K bias = 0)
            pl.BlockSpec((1, D, D), per_layer),          # W_o   (self)
            pl.BlockSpec((1, 1, D), per_layer),          # b_o
            pl.BlockSpec((1, D, D), per_layer),          # W_q   (cross)
            pl.BlockSpec((1, 1, D), per_layer),          # b_q
            pl.BlockSpec((1, D, 2 * D), per_layer),      # W_kv  (cross, K bias = 0)
            pl.BlockSpec((1, 1, 2 * D), per_layer),      # b_kv
            pl.BlockSpec((1, D, D), per_layer),          # W_o   (cross)
            pl.BlockSpec((1, 1, D), per_layer),          # b_o   (cross)
            pl.BlockSpec((1, D, D_MLP), per_layer),      # W_mlp1
            pl.BlockSpec((1, 1, D_MLP), per_layer),      # b_mlp1
            pl.BlockSpec((1, D_MLP, D), per_layer),      # W_mlp2
            pl.BlockSpec((1, 1, D), per_layer),          # b_mlp2
            pl.BlockSpec((2, D), fixed2),                # final LN (g; b)
            pl.BlockSpec((D, VOCAB_PAD), fixed2),        # pre-transposed padded emb
        ],
        out_specs=pl.BlockSpec((1, T, VOCAB_PAD), per_batch),
        scratch_shapes=[pltpu.VMEM((T, D), jnp.float32)],
        compiler_params=pltpu.CompilerParams(
            dimension_semantics=("parallel", "arbitrary")),
    )(x0, xa, packed["ln"], packed["w_qkv"], packed["b_qkv"], packed["w_o"],
      packed["b_o"], packed["xw_q"], packed["xb_q"], packed["xw_kv"],
      packed["xb_kv"], packed["xw_o"], packed["xb_o"], packed["w1"],
      packed["b1"], packed["w2"], packed["b2"], packed["ln_f"],
      packed["w_logits"])

    return out[:, :, :VOCAB]


# ----------------------------- parameter init / packing ------------------------------
def init_params(key):
    keys = iter(jax.random.split(key, 128))

    def nrm(shape, std=0.02):
        return std * jax.random.normal(next(keys), shape, jnp.float32)

    params = {
        "tok_emb": nrm((VOCAB, D_MODEL)),
        "pos_emb": nrm((N_CTX, D_MODEL)),
        "ln_g": jnp.ones((D_MODEL,), jnp.float32),
        "ln_b": jnp.zeros((D_MODEL,), jnp.float32),
        "blocks": [],
    }
    for _ in range(N_LAYER):
        blk = {
            "attn_ln_g": jnp.ones((D_MODEL,), jnp.float32),
            "attn_ln_b": jnp.zeros((D_MODEL,), jnp.float32),
            "wq": nrm((D_MODEL, D_MODEL)), "bq": nrm((D_MODEL,)),
            "wk": nrm((D_MODEL, D_MODEL)),                      # whisper: key has no bias
            "wv": nrm((D_MODEL, D_MODEL)), "bv": nrm((D_MODEL,)),
            "wo": nrm((D_MODEL, D_MODEL)), "bo": nrm((D_MODEL,)),
            "x_ln_g": jnp.ones((D_MODEL,), jnp.float32),
            "x_ln_b": jnp.zeros((D_MODEL,), jnp.float32),
            "xwq": nrm((D_MODEL, D_MODEL)), "xbq": nrm((D_MODEL,)),
            "xwk": nrm((D_MODEL, D_MODEL)),
            "xwv": nrm((D_MODEL, D_MODEL)), "xbv": nrm((D_MODEL,)),
            "xwo": nrm((D_MODEL, D_MODEL)), "xbo": nrm((D_MODEL,)),
            "mlp_ln_g": jnp.ones((D_MODEL,), jnp.float32),
            "mlp_ln_b": jnp.zeros((D_MODEL,), jnp.float32),
            "w1": nrm((D_MODEL, D_MLP)), "b1": nrm((D_MLP,)),
            "w2": nrm((D_MLP, D_MODEL)), "b2": nrm((D_MODEL,)),
        }
        params["blocks"].append(blk)
    return params


def pack_params(params):
    """Stack per-layer weights to (N_LAYER, ...), fuse QKV / cross-KV, pre-transpose
    and lane-pad the logits weight. Done once, outside the forward."""
    zeros_d = jnp.zeros((D_MODEL,), jnp.float32)
    ln, w_qkv, b_qkv, w_o, b_o = [], [], [], [], []
    xw_q, xb_q, xw_kv, xb_kv, xw_o, xb_o = [], [], [], [], [], []
    w1, b1, w2, b2 = [], [], [], []
    for blk in params["blocks"]:
        ln.append(jnp.stack([blk["attn_ln_g"], blk["attn_ln_b"],
                             blk["x_ln_g"], blk["x_ln_b"],
                             blk["mlp_ln_g"], blk["mlp_ln_b"]], axis=0))
        w_qkv.append(jnp.concatenate([blk["wq"], blk["wk"], blk["wv"]], axis=1))
        b_qkv.append(jnp.concatenate([blk["bq"], zeros_d, blk["bv"]])[None, :])
        w_o.append(blk["wo"]); b_o.append(blk["bo"][None, :])
        xw_q.append(blk["xwq"]); xb_q.append(blk["xbq"][None, :])
        xw_kv.append(jnp.concatenate([blk["xwk"], blk["xwv"]], axis=1))
        xb_kv.append(jnp.concatenate([zeros_d, blk["xbv"]])[None, :])
        xw_o.append(blk["xwo"]); xb_o.append(blk["xbo"][None, :])
        w1.append(blk["w1"]); b1.append(blk["b1"][None, :])
        w2.append(blk["w2"]); b2.append(blk["b2"][None, :])

    w_logits = jnp.zeros((D_MODEL, VOCAB_PAD), jnp.float32)
    w_logits = w_logits.at[:, :VOCAB].set(params["tok_emb"].T)

    return {
        "tok_emb": params["tok_emb"], "pos_emb": params["pos_emb"],
        "ln": jnp.stack(ln),
        "w_qkv": jnp.stack(w_qkv), "b_qkv": jnp.stack(b_qkv),
        "w_o": jnp.stack(w_o), "b_o": jnp.stack(b_o),
        "xw_q": jnp.stack(xw_q), "xb_q": jnp.stack(xb_q),
        "xw_kv": jnp.stack(xw_kv), "xb_kv": jnp.stack(xb_kv),
        "xw_o": jnp.stack(xw_o), "xb_o": jnp.stack(xb_o),
        "w1": jnp.stack(w1), "b1": jnp.stack(b1),
        "w2": jnp.stack(w2), "b2": jnp.stack(b2),
        "ln_f": jnp.stack([params["ln_g"], params["ln_b"]]),
        "w_logits": w_logits,
    }


# ----------------------------- pure-JAX reference ------------------------------------
def _ref_ln(x, g, b):
    m = jnp.mean(x, -1, keepdims=True)
    v = jnp.mean((x - m) ** 2, -1, keepdims=True)
    return (x - m) * lax.rsqrt(v + LN_EPS) * g + b


def _ref_gelu(x):
    return 0.5 * x * (1.0 + jax.scipy.special.erf(x / np.sqrt(2.0)))


def _ref_mha(q, k, v, mask):
    B, T, D = q.shape
    S = k.shape[1]
    Dh = D // N_HEAD
    scale = float(Dh) ** -0.25
    qh = q.reshape(B, T, N_HEAD, Dh).transpose(0, 2, 1, 3) * scale
    kh = k.reshape(B, S, N_HEAD, Dh).transpose(0, 2, 1, 3) * scale
    vh = v.reshape(B, S, N_HEAD, Dh).transpose(0, 2, 1, 3)
    s = jnp.einsum("bhtd,bhsd->bhts", qh, kh) + mask
    p = jax.nn.softmax(s, axis=-1)
    o = jnp.einsum("bhts,bhsd->bhtd", p, vh)
    return o.transpose(0, 2, 1, 3).reshape(B, T, D)


def reference_logits(params, tokens, xa):
    B, T = tokens.shape
    S = xa.shape[1]
    x = (params["tok_emb"][tokens] + params["pos_emb"][:T]).astype(jnp.float32)
    causal = jnp.where(jnp.triu(jnp.ones((T, T), jnp.bool_), k=1),
                       jnp.float32(-1e9), jnp.float32(0.0))
    zero_mask = jnp.zeros((T, S), jnp.float32)
    for blk in params["blocks"]:
        h = _ref_ln(x, blk["attn_ln_g"], blk["attn_ln_b"])
        a = _ref_mha(h @ blk["wq"] + blk["bq"], h @ blk["wk"],
                     h @ blk["wv"] + blk["bv"], causal)
        x = x + (a @ blk["wo"] + blk["bo"])
        h = _ref_ln(x, blk["x_ln_g"], blk["x_ln_b"])
        a = _ref_mha(h @ blk["xwq"] + blk["xbq"], xa @ blk["xwk"],
                     xa @ blk["xwv"] + blk["xbv"], zero_mask)
        x = x + (a @ blk["xwo"] + blk["xbo"])
        h = _ref_ln(x, blk["mlp_ln_g"], blk["mlp_ln_b"])
        h = _ref_gelu(h @ blk["w1"] + blk["b1"])
        x = x + (h @ blk["w2"] + blk["b2"])
    x = _ref_ln(x, params["ln_g"], params["ln_b"])
    return x @ params["tok_emb"].T


# ----------------------------- main ----------------------------------------------------
if __name__ == "__main__":
    key = jax.random.PRNGKey(0)
    kp, kt, kx = jax.random.split(key, 3)
    params = init_params(kp)
    packed = pack_params(params)
    tokens = jax.random.randint(kt, (BATCH, SEQ), 0, VOCAB, dtype=jnp.int32)
    xa = jax.random.normal(kx, (BATCH, AUDIO_CTX, D_MODEL), jnp.float32)

    logits = jax.jit(decoder_logits)(packed, tokens, xa)
    logits = jax.block_until_ready(logits)

    assert logits.shape == (BATCH, SEQ, VOCAB)
    assert bool(jnp.all(jnp.isfinite(logits)))

    ref = reference_logits(params, tokens, xa)
    np.testing.assert_allclose(np.asarray(logits), np.asarray(ref), rtol=2e-2, atol=2e-2)

    print("KERNEL_OK")
</pallas_src>

<mosaic_0001>
module attributes {stable_mosaic.version = 11 : i64} {
  func.func @decoder_kernel(%arg0: i32, %arg1: i32, %arg2: memref<1x8x32xf32, #tpu.memory_space<vmem>>, %arg3: memref<1x16x32xf32, #tpu.memory_space<vmem>>, %arg4: memref<1x6x32xf32, #tpu.memory_space<vmem>>, %arg5: memref<1x32x96xf32, #tpu.memory_space<vmem>>, %arg6: memref<1x1x96xf32, #tpu.memory_space<vmem>>, %arg7: memref<1x32x32xf32, #tpu.memory_space<vmem>>, %arg8: memref<1x1x32xf32, #tpu.memory_space<vmem>>, %arg9: memref<1x32x32xf32, #tpu.memory_space<vmem>>, %arg10: memref<1x1x32xf32, #tpu.memory_space<vmem>>, %arg11: memref<1x32x64xf32, #tpu.memory_space<vmem>>, %arg12: memref<1x1x64xf32, #tpu.memory_space<vmem>>, %arg13: memref<1x32x32xf32, #tpu.memory_space<vmem>>, %arg14: memref<1x1x32xf32, #tpu.memory_space<vmem>>, %arg15: memref<1x32x128xf32, #tpu.memory_space<vmem>>, %arg16: memref<1x1x128xf32, #tpu.memory_space<vmem>>, %arg17: memref<1x128x32xf32, #tpu.memory_space<vmem>>, %arg18: memref<1x1x32xf32, #tpu.memory_space<vmem>>, %arg19: memref<2x32xf32, #tpu.memory_space<vmem>>, %arg20: memref<32x128xf32, #tpu.memory_space<vmem>>, %arg21: memref<1x8x128xf32, #tpu.memory_space<vmem>>, %arg22: memref<8x32xf32, #tpu.memory_space<vmem>>) attributes {dimension_semantics = [#tpu.dimension_semantics<parallel>, #tpu.dimension_semantics<arbitrary>], iteration_bounds = array<i64: 2, 2>, scalar_prefetch = 0 : i64, scratch_operands = 1 : i64, tpu.core_type = #tpu.core_type<tc>, window_params = [{transform_indices = @transform_0, window_bounds = array<i64: 1, 8, 32>}, {transform_indices = @transform_1, window_bounds = array<i64: 1, 16, 32>}, {transform_indices = @transform_2, window_bounds = array<i64: 1, 6, 32>}, {transform_indices = @transform_3, window_bounds = array<i64: 1, 32, 96>}, {transform_indices = @transform_4, window_bounds = array<i64: 1, 1, 96>}, {transform_indices = @transform_5, window_bounds = array<i64: 1, 32, 32>}, {transform_indices = @transform_6, window_bounds = array<i64: 1, 1, 32>}, {transform_indices = @transform_7, window_bounds = array<i64: 1, 32, 32>}, {transform_indices = @transform_8, window_bounds = array<i64: 1, 1, 32>}, {transform_indices = @transform_9, window_bounds = array<i64: 1, 32, 64>}, {transform_indices = @transform_10, window_bounds = array<i64: 1, 1, 64>}, {transform_indices = @transform_11, window_bounds = array<i64: 1, 32, 32>}, {transform_indices = @transform_12, window_bounds = array<i64: 1, 1, 32>}, {transform_indices = @transform_13, window_bounds = array<i64: 1, 32, 128>}, {transform_indices = @transform_14, window_bounds = array<i64: 1, 1, 128>}, {transform_indices = @transform_15, window_bounds = array<i64: 1, 128, 32>}, {transform_indices = @transform_16, window_bounds = array<i64: 1, 1, 32>}, {pipeline_mode = #tpu.pipeline_mode<synchronous>, transform_indices = @transform_17, window_bounds = array<i64: 2, 32>}, {pipeline_mode = #tpu.pipeline_mode<synchronous>, transform_indices = @transform_18, window_bounds = array<i64: 32, 128>}, {transform_indices = @transform_19, window_bounds = array<i64: 1, 8, 128>}]} {
    %c0_i32 = arith.constant 0 : i32
    %0 = arith.cmpi eq, %arg1, %c0_i32 : i32
    %1 = arith.extui %0 : i1 to i32
    %c0_i32_0 = arith.constant 0 : i32
    %2 = arith.cmpi ne, %1, %c0_i32_0 : i32
    scf.if %2 {
      %c0_114 = arith.constant 0 : index
      %c0_115 = arith.constant 0 : index
      %c0_116 = arith.constant 0 : index
      %290 = vector.load %arg2[%c0_114, %c0_115, %c0_116] : memref<1x8x32xf32, #tpu.memory_space<vmem>>, vector<1x8x32xf32>
      %291 = vector.shape_cast %290 : vector<1x8x32xf32> to vector<8x32xf32>
      %c0_117 = arith.constant 0 : index
      %c0_118 = arith.constant 0 : index
      %292 = vector.load %arg22[%c0_117, %c0_118] : memref<8x32xf32, #tpu.memory_space<vmem>>, vector<8x32xf32>
      tpu.vector_store %arg22[%c0_117, %c0_118], %291 {strides = array<i32>} : memref<8x32xf32, #tpu.memory_space<vmem>>, vector<8x32xf32>,
    } else {
    }
    %c0 = arith.constant 0 : index
    %c0_1 = arith.constant 0 : index
    %3 = vector.load %arg22[%c0, %c0_1] : memref<8x32xf32, #tpu.memory_space<vmem>>, vector<8x32xf32>
    %c0_2 = arith.constant 0 : index
    %c0_3 = arith.constant 0 : index
    %c0_4 = arith.constant 0 : index
    %4 = vector.load %arg3[%c0_2, %c0_3, %c0_4] : memref<1x16x32xf32, #tpu.memory_space<vmem>>, vector<1x16x32xf32>
    %5 = vector.shape_cast %4 : vector<1x16x32xf32> to vector<16x32xf32>
    %c0_5 = arith.constant 0 : index
    %c0_6 = arith.constant 0 : index
    %c0_7 = arith.constant 0 : index
    %6 = vector.load %arg4[%c0_5, %c0_6, %c0_7] : memref<1x6x32xf32, #tpu.memory_space<vmem>>, vector<1x6x32xf32>
    %7 = vector.shape_cast %6 : vector<1x6x32xf32> to vector<6x32xf32>
    %8 = tpu.iota {dimensions = array<i32: 0>} : vector<8x8xi32>
    %9 = tpu.iota {dimensions = array<i32: 1>} : vector<8x8xi32>
    %10 = arith.cmpi sgt, %9, %8 : vector<8x8xi32>
    %cst = arith.constant -1.000000e+09 : f32
    %cst_8 = arith.constant 0.000000e+00 : f32
    %11 = vector.broadcast %cst : f32 to vector<8x8xf32>
    %12 = vector.broadcast %cst_8 : f32 to vector<8x8xf32>
    %13 = arith.select %10, %11, %12 : vector<8x8xi1>, vector<8x8xf32>
    %14 = vector.extract_strided_slice %7 {offsets = [0, 0], sizes = [1, 32], strides = [1, 1]} : vector<6x32xf32> to vector<1x32xf32>
    %15 = vector.extract_strided_slice %7 {offsets = [1, 0], sizes = [1, 32], strides = [1, 1]} : vector<6x32xf32> to vector<1x32xf32>
    %cst_9 = arith.constant dense<0.000000e+00> : vector<8xf32>
    %16 = vector.multi_reduction <add>, %3, %cst_9 [1] : vector<8x32xf32> to vector<8xf32>
    %17 = vector.shape_cast %16 : vector<8xf32> to vector<8x1xf32>
    %cst_10 = arith.constant 3.200000e+01 : f32
    %18 = vector.broadcast %cst_10 : f32 to vector<8x1xf32>
    %19 = arith.divf %17, %18 : vector<8x1xf32>
    %20 = vector.broadcast %19 : vector<8x1xf32> to vector<8x32xf32>
    %21 = arith.subf %3, %20 : vector<8x32xf32>
    %22 = arith.mulf %21, %21 : vector<8x32xf32>
    %cst_11 = arith.constant dense<0.000000e+00> : vector<8xf32>
    %23 = vector.multi_reduction <add>, %22, %cst_11 [1] : vector<8x32xf32> to vector<8xf32>
    %24 = vector.shape_cast %23 : vector<8xf32> to vector<8x1xf32>
    %cst_12 = arith.constant 3.200000e+01 : f32
    %25 = vector.broadcast %cst_12 : f32 to vector<8x1xf32>
    %26 = arith.divf %24, %25 : vector<8x1xf32>
    %27 = vector.broadcast %19 : vector<8x1xf32> to vector<8x32xf32>
    %28 = arith.subf %3, %27 : vector<8x32xf32>
    %cst_13 = arith.constant 9.99999974E-6 : f32
    %29 = vector.broadcast %cst_13 : f32 to vector<8x1xf32>
    %30 = arith.addf %26, %29 : vector<8x1xf32>
    %31 = math.rsqrt %30 : vector<8x1xf32>
    %32 = vector.broadcast %31 : vector<8x1xf32> to vector<8x32xf32>
    %33 = arith.mulf %28, %32 : vector<8x32xf32>
    %34 = vector.broadcast %14 : vector<1x32xf32> to vector<8x32xf32>
    %35 = arith.mulf %33, %34 : vector<8x32xf32>
    %36 = vector.broadcast %15 : vector<1x32xf32> to vector<8x32xf32>
    %37 = arith.addf %35, %36 : vector<8x32xf32>
    %c0_14 = arith.constant 0 : index
    %c0_15 = arith.constant 0 : index
    %c0_16 = arith.constant 0 : index
    %38 = vector.load %arg5[%c0_14, %c0_15, %c0_16] : memref<1x32x96xf32, #tpu.memory_space<vmem>>, vector<1x32x96xf32>
    %39 = vector.shape_cast %38 : vector<1x32x96xf32> to vector<32x96xf32>
    %cst_17 = arith.constant dense<0.000000e+00> : vector<8x96xf32>
    %40 = tpu.matmul %37, %39, %cst_17 {dimension_numbers = #tpu.dot_dimension_numbers<[1], [0], [0], [1], [0, 0, 1, 1], [], []>} : vector<8x32xf32>, vector<32x96xf32>, vector<8x96xf32> -> vector<8x96xf32>
    %c0_18 = arith.constant 0 : index
    %c0_19 = arith.constant 0 : index
    %c0_20 = arith.constant 0 : index
    %41 = vector.load %arg6[%c0_18, %c0_19, %c0_20] : memref<1x1x96xf32, #tpu.memory_space<vmem>>, vector<1x1x96xf32>
    %42 = vector.shape_cast %41 : vector<1x1x96xf32> to vector<1x96xf32>
    %43 = vector.broadcast %42 : vector<1x96xf32> to vector<8x96xf32>
    %44 = arith.addf %40, %43 : vector<8x96xf32>
    %45 = vector.extract_strided_slice %44 {offsets = [0, 0], sizes = [8, 32], strides = [1, 1]} : vector<8x96xf32> to vector<8x32xf32>
    %cst_21 = arith.constant 0.353553385 : f32
    %46 = vector.broadcast %cst_21 : f32 to vector<8x32xf32>
    %47 = arith.mulf %45, %46 : vector<8x32xf32>
    %48 = vector.extract_strided_slice %44 {offsets = [0, 32], sizes = [8, 32], strides = [1, 1]} : vector<8x96xf32> to vector<8x32xf32>
    %49 = vector.extract_strided_slice %44 {offsets = [0, 64], sizes = [8, 32], strides = [1, 1]} : vector<8x96xf32> to vector<8x32xf32>
    %50 = vector.extract_strided_slice %47 {offsets = [0, 0], sizes = [8, 8], strides = [1, 1]} : vector<8x32xf32> to vector<8x8xf32>
    %51 = vector.extract_strided_slice %48 {offsets = [0, 0], sizes = [8, 8], strides = [1, 1]} : vector<8x32xf32> to vector<8x8xf32>
    %52 = vector.extract_strided_slice %49 {offsets = [0, 0], sizes = [8, 8], strides = [1, 1]} : vector<8x32xf32> to vector<8x8xf32>
    %cst_22 = arith.constant dense<0.000000e+00> : vector<8x8xf32>
    %53 = tpu.matmul %50, %51, %cst_22 {dimension_numbers = #tpu.dot_dimension_numbers<[1], [1], [0], [0], [0, 0, 1, 0], [], []>} : vector<8x8xf32>, vector<8x8xf32>, vector<8x8xf32> -> vector<8x8xf32>
    %54 = arith.addf %53, %13 : vector<8x8xf32>
    %cst_23 = arith.constant dense<0xFF800000> : vector<8xf32>
    %55 = vector.multi_reduction <maximumf>, %54, %cst_23 [1] : vector<8x8xf32> to vector<8xf32>
    %56 = vector.shape_cast %55 : vector<8xf32> to vector<8x1xf32>
    %57 = vector.broadcast %56 : vector<8x1xf32> to vector<8x8xf32>
    %58 = arith.subf %54, %57 : vector<8x8xf32>
    %59 = math.exp %58 : vector<8x8xf32>
    %cst_24 = arith.constant dense<0.000000e+00> : vector<8xf32>
    %60 = vector.multi_reduction <add>, %59, %cst_24 [1] : vector<8x8xf32> to vector<8xf32>
    %61 = vector.shape_cast %60 : vector<8xf32> to vector<8x1xf32>
    %62 = tpu.reciprocal %61 {approx = true} : vector<8x1xf32> -> vector<8x1xf32>
    %63 = vector.broadcast %62 : vector<8x1xf32> to vector<8x8xf32>
    %64 = arith.mulf %59, %63 : vector<8x8xf32>
    %cst_25 = arith.constant dense<0.000000e+00> : vector<8x8xf32>
    %65 = tpu.matmul %64, %52, %cst_25 {dimension_numbers = #tpu.dot_dimension_numbers<[1], [0], [0], [1], [0, 0, 1, 1], [], []>} : vector<8x8xf32>, vector<8x8xf32>, vector<8x8xf32> -> vector<8x8xf32>
    %66 = vector.extract_strided_slice %47 {offsets = [0, 8], sizes = [8, 8], strides = [1, 1]} : vector<8x32xf32> to vector<8x8xf32>
    %67 = vector.extract_strided_slice %48 {offsets = [0, 8], sizes = [8, 8], strides = [1, 1]} : vector<8x32xf32> to vector<8x8xf32>
    %68 = vector.extract_strided_slice %49 {offsets = [0, 8], sizes = [8, 8], strides = [1, 1]} : vector<8x32xf32> to vector<8x8xf32>
    %cst_26 = arith.constant dense<0.000000e+00> : vector<8x8xf32>
    %69 = tpu.matmul %66, %67, %cst_26 {dimension_numbers = #tpu.dot_dimension_numbers<[1], [1], [0], [0], [0, 0, 1, 0], [], []>} : vector<8x8xf32>, vector<8x8xf32>, vector<8x8xf32> -> vector<8x8xf32>
    %70 = arith.addf %69, %13 : vector<8x8xf32>
    %cst_27 = arith.constant dense<0xFF800000> : vector<8xf32>
    %71 = vector.multi_reduction <maximumf>, %70, %cst_27 [1] : vector<8x8xf32> to vector<8xf32>
    %72 = vector.shape_cast %71 : vector<8xf32> to vector<8x1xf32>
    %73 = vector.broadcast %72 : vector<8x1xf32> to vector<8x8xf32>
    %74 = arith.subf %70, %73 : vector<8x8xf32>
    %75 = math.exp %74 : vector<8x8xf32>
    %cst_28 = arith.constant dense<0.000000e+00> : vector<8xf32>
    %76 = vector.multi_reduction <add>, %75, %cst_28 [1] : vector<8x8xf32> to vector<8xf32>
    %77 = vector.shape_cast %76 : vector<8xf32> to vector<8x1xf32>
    %78 = tpu.reciprocal %77 {approx = true} : vector<8x1xf32> -> vector<8x1xf32>
    %79 = vector.broadcast %78 : vector<8x1xf32> to vector<8x8xf32>
    %80 = arith.mulf %75, %79 : vector<8x8xf32>
    %cst_29 = arith.constant dense<0.000000e+00> : vector<8x8xf32>
    %81 = tpu.matmul %80, %68, %cst_29 {dimension_numbers = #tpu.dot_dimension_numbers<[1], [0], [0], [1], [0, 0, 1, 1], [], []>} : vector<8x8xf32>, vector<8x8xf32>, vector<8x8xf32> -> vector<8x8xf32>
    %82 = vector.extract_strided_slice %47 {offsets = [0, 16], sizes = [8, 8], strides = [1, 1]} : vector<8x32xf32> to vector<8x8xf32>
    %83 = vector.extract_strided_slice %48 {offsets = [0, 16], sizes = [8, 8], strides = [1, 1]} : vector<8x32xf32> to vector<8x8xf32>
    %84 = vector.extract_strided_slice %49 {offsets = [0, 16], sizes = [8, 8], strides = [1, 1]} : vector<8x32xf32> to vector<8x8xf32>
    %cst_30 = arith.constant dense<0.000000e+00> : vector<8x8xf32>
    %85 = tpu.matmul %82, %83, %cst_30 {dimension_numbers = #tpu.dot_dimension_numbers<[1], [1], [0], [0], [0, 0, 1, 0], [], []>} : vector<8x8xf32>, vector<8x8xf32>, vector<8x8xf32> -> vector<8x8xf32>
    %86 = arith.addf %85, %13 : vector<8x8xf32>
    %cst_31 = arith.constant dense<0xFF800000> : vector<8xf32>
    %87 = vector.multi_reduction <maximumf>, %86, %cst_31 [1] : vector<8x8xf32> to vector<8xf32>
    %88 = vector.shape_cast %87 : vector<8xf32> to vector<8x1xf32>
    %89 = vector.broadcast %88 : vector<8x1xf32> to vector<8x8xf32>
    %90 = arith.subf %86, %89 : vector<8x8xf32>
    %91 = math.exp %90 : vector<8x8xf32>
    %cst_32 = arith.constant dense<0.000000e+00> : vector<8xf32>
    %92 = vector.multi_reduction <add>, %91, %cst_32 [1] : vector<8x8xf32> to vector<8xf32>
    %93 = vector.shape_cast %92 : vector<8xf32> to vector<8x1xf32>
    %94 = tpu.reciprocal %93 {approx = true} : vector<8x1xf32> -> vector<8x1xf32>
    %95 = vector.broadcast %94 : vector<8x1xf32> to vector<8x8xf32>
    %96 = arith.mulf %91, %95 : vector<8x8xf32>
    %cst_33 = arith.constant dense<0.000000e+00> : vector<8x8xf32>
    %97 = tpu.matmul %96, %84, %cst_33 {dimension_numbers = #tpu.dot_dimension_numbers<[1], [0], [0], [1], [0, 0, 1, 1], [], []>} : vector<8x8xf32>, vector<8x8xf32>, vector<8x8xf32> -> vector<8x8xf32>
    %98 = vector.extract_strided_slice %47 {offsets = [0, 24], sizes = [8, 8], strides = [1, 1]} : vector<8x32xf32> to vector<8x8xf32>
    %99 = vector.extract_strided_slice %48 {offsets = [0, 24], sizes = [8, 8], strides = [1, 1]} : vector<8x32xf32> to vector<8x8xf32>
    %100 = vector.extract_strided_slice %49 {offsets = [0, 24], sizes = [8, 8], strides = [1, 1]} : vector<8x32xf32> to vector<8x8xf32>
    %cst_34 = arith.constant dense<0.000000e+00> : vector<8x8xf32>
    %101 = tpu.matmul %98, %99, %cst_34 {dimension_numbers = #tpu.dot_dimension_numbers<[1], [1], [0], [0], [0, 0, 1, 0], [], []>} : vector<8x8xf32>, vector<8x8xf32>, vector<8x8xf32> -> vector<8x8xf32>
    %102 = arith.addf %101, %13 : vector<8x8xf32>
    %cst_35 = arith.constant dense<0xFF800000> : vector<8xf32>
    %103 = vector.multi_reduction <maximumf>, %102, %cst_35 [1] : vector<8x8xf32> to vector<8xf32>
    %104 = vector.shape_cast %103 : vector<8xf32> to vector<8x1xf32>
    %105 = vector.broadcast %104 : vector<8x1xf32> to vector<8x8xf32>
    %106 = arith.subf %102, %105 : vector<8x8xf32>
    %107 = math.exp %106 : vector<8x8xf32>
    %cst_36 = arith.constant dense<0.000000e+00> : vector<8xf32>
    %108 = vector.multi_reduction <add>, %107, %cst_36 [1] : vector<8x8xf32> to vector<8xf32>
    %109 = vector.shape_cast %108 : vector<8xf32> to vector<8x1xf32>
    %110 = tpu.reciprocal %109 {approx = true} : vector<8x1xf32> -> vector<8x1xf32>
    %111 = vector.broadcast %110 : vector<8x1xf32> to vector<8x8xf32>
    %112 = arith.mulf %107, %111 : vector<8x8xf32>
    %cst_37 = arith.constant dense<0.000000e+00> : vector<8x8xf32>
    %113 = tpu.matmul %112, %100, %cst_37 {dimension_numbers = #tpu.dot_dimension_numbers<[1], [0], [0], [1], [0, 0, 1, 1], [], []>} : vector<8x8xf32>, vector<8x8xf32>, vector<8x8xf32> -> vector<8x8xf32>
    %114 = tpu.concatenate %65, %81, %97, %113 in 1 : vector<8x8xf32>, vector<8x8xf32>, vector<8x8xf32>, vector<8x8xf32> -> vector<8x32xf32>
    %c0_38 = arith.constant 0 : index
    %c0_39 = arith.constant 0 : index
    %c0_40 = arith.constant 0 : index
    %115 = vector.load %arg7[%c0_38, %c0_39, %c0_40] : memref<1x32x32xf32, #tpu.memory_space<vmem>>, vector<1x32x32xf32>
    %116 = vector.shape_cast %115 : vector<1x32x32xf32> to vector<32x32xf32>
    %cst_41 = arith.constant dense<0.000000e+00> : vector<8x32xf32>
    %117 = tpu.matmul %114, %116, %cst_41 {dimension_numbers = #tpu.dot_dimension_numbers<[1], [0], [0], [1], [0, 0, 1, 1], [], []>} : vector<8x32xf32>, vector<32x32xf32>, vector<8x32xf32> -> vector<8x32xf32>
    %118 = arith.addf %3, %117 : vector<8x32xf32>
    %c0_42 = arith.constant 0 : index
    %c0_43 = arith.constant 0 : index
    %c0_44 = arith.constant 0 : index
    %119 = vector.load %arg8[%c0_42, %c0_43, %c0_44] : memref<1x1x32xf32, #tpu.memory_space<vmem>>, vector<1x1x32xf32>
    %120 = vector.shape_cast %119 : vector<1x1x32xf32> to vector<1x32xf32>
    %121 = vector.broadcast %120 : vector<1x32xf32> to vector<8x32xf32>
    %122 = arith.addf %118, %121 : vector<8x32xf32>
    %123 = vector.extract_strided_slice %7 {offsets = [2, 0], sizes = [1, 32], strides = [1, 1]} : vector<6x32xf32> to vector<1x32xf32>
    %124 = vector.extract_strided_slice %7 {offsets = [3, 0], sizes = [1, 32], strides = [1, 1]} : vector<6x32xf32> to vector<1x32xf32>
    %cst_45 = arith.constant dense<0.000000e+00> : vector<8xf32>
    %125 = vector.multi_reduction <add>, %122, %cst_45 [1] : vector<8x32xf32> to vector<8xf32>
    %126 = vector.shape_cast %125 : vector<8xf32> to vector<8x1xf32>
    %cst_46 = arith.constant 3.200000e+01 : f32
    %127 = vector.broadcast %cst_46 : f32 to vector<8x1xf32>
    %128 = arith.divf %126, %127 : vector<8x1xf32>
    %129 = vector.broadcast %128 : vector<8x1xf32> to vector<8x32xf32>
    %130 = arith.subf %122, %129 : vector<8x32xf32>
    %131 = arith.mulf %130, %130 : vector<8x32xf32>
    %cst_47 = arith.constant dense<0.000000e+00> : vector<8xf32>
    %132 = vector.multi_reduction <add>, %131, %cst_47 [1] : vector<8x32xf32> to vector<8xf32>
    %133 = vector.shape_cast %132 : vector<8xf32> to vector<8x1xf32>
    %cst_48 = arith.constant 3.200000e+01 : f32
    %134 = vector.broadcast %cst_48 : f32 to vector<8x1xf32>
    %135 = arith.divf %133, %134 : vector<8x1xf32>
    %136 = vector.broadcast %128 : vector<8x1xf32> to vector<8x32xf32>
    %137 = arith.subf %122, %136 : vector<8x32xf32>
    %cst_49 = arith.constant 9.99999974E-6 : f32
    %138 = vector.broadcast %cst_49 : f32 to vector<8x1xf32>
    %139 = arith.addf %135, %138 : vector<8x1xf32>
    %140 = math.rsqrt %139 : vector<8x1xf32>
    %141 = vector.broadcast %140 : vector<8x1xf32> to vector<8x32xf32>
    %142 = arith.mulf %137, %141 : vector<8x32xf32>
    %143 = vector.broadcast %123 : vector<1x32xf32> to vector<8x32xf32>
    %144 = arith.mulf %142, %143 : vector<8x32xf32>
    %145 = vector.broadcast %124 : vector<1x32xf32> to vector<8x32xf32>
    %146 = arith.addf %144, %145 : vector<8x32xf32>
    %c0_50 = arith.constant 0 : index
    %c0_51 = arith.constant 0 : index
    %c0_52 = arith.constant 0 : index
    %147 = vector.load %arg9[%c0_50, %c0_51, %c0_52] : memref<1x32x32xf32, #tpu.memory_space<vmem>>, vector<1x32x32xf32>
    %148 = vector.shape_cast %147 : vector<1x32x32xf32> to vector<32x32xf32>
    %cst_53 = arith.constant dense<0.000000e+00> : vector<8x32xf32>
    %149 = tpu.matmul %146, %148, %cst_53 {dimension_numbers = #tpu.dot_dimension_numbers<[1], [0], [0], [1], [0, 0, 1, 1], [], []>} : vector<8x32xf32>, vector<32x32xf32>, vector<8x32xf32> -> vector<8x32xf32>
    %c0_54 = arith.constant 0 : index
    %c0_55 = arith.constant 0 : index
    %c0_56 = arith.constant 0 : index
    %150 = vector.load %arg10[%c0_54, %c0_55, %c0_56] : memref<1x1x32xf32, #tpu.memory_space<vmem>>, vector<1x1x32xf32>
    %151 = vector.shape_cast %150 : vector<1x1x32xf32> to vector<1x32xf32>
    %152 = vector.broadcast %151 : vector<1x32xf32> to vector<8x32xf32>
    %153 = arith.addf %149, %152 : vector<8x32xf32>
    %cst_57 = arith.constant 0.353553385 : f32
    %154 = vector.broadcast %cst_57 : f32 to vector<8x32xf32>
    %155 = arith.mulf %153, %154 : vector<8x32xf32>
    %c0_58 = arith.constant 0 : index
    %c0_59 = arith.constant 0 : index
    %c0_60 = arith.constant 0 : index
    %156 = vector.load %arg11[%c0_58, %c0_59, %c0_60] : memref<1x32x64xf32, #tpu.memory_space<vmem>>, vector<1x32x64xf32>
    %157 = vector.shape_cast %156 : vector<1x32x64xf32> to vector<32x64xf32>
    %cst_61 = arith.constant dense<0.000000e+00> : vector<16x64xf32>
    %158 = tpu.matmul %5, %157, %cst_61 {dimension_numbers = #tpu.dot_dimension_numbers<[1], [0], [0], [1], [0, 0, 1, 1], [], []>} : vector<16x32xf32>, vector<32x64xf32>, vector<16x64xf32> -> vector<16x64xf32>
    %c0_62 = arith.constant 0 : index
    %c0_63 = arith.constant 0 : index
    %c0_64 = arith.constant 0 : index
    %159 = vector.load %arg12[%c0_62, %c0_63, %c0_64] : memref<1x1x64xf32, #tpu.memory_space<vmem>>, vector<1x1x64xf32>
    %160 = vector.shape_cast %159 : vector<1x1x64xf32> to vector<1x64xf32>
    %161 = vector.broadcast %160 : vector<1x64xf32> to vector<16x64xf32>
    %162 = arith.addf %158, %161 : vector<16x64xf32>
    %163 = vector.extract_strided_slice %162 {offsets = [0, 0], sizes = [16, 32], strides = [1, 1]} : vector<16x64xf32> to vector<16x32xf32>
    %164 = vector.extract_strided_slice %162 {offsets = [0, 32], sizes = [16, 32], strides = [1, 1]} : vector<16x64xf32> to vector<16x32xf32>
    %165 = vector.extract_strided_slice %155 {offsets = [0, 0], sizes = [8, 8], strides = [1, 1]} : vector<8x32xf32> to vector<8x8xf32>
    %166 = vector.extract_strided_slice %163 {offsets = [0, 0], sizes = [16, 8], strides = [1, 1]} : vector<16x32xf32> to vector<16x8xf32>
    %167 = vector.extract_strided_slice %164 {offsets = [0, 0], sizes = [16, 8], strides = [1, 1]} : vector<16x32xf32> to vector<16x8xf32>
    %cst_65 = arith.constant dense<0.000000e+00> : vector<8x16xf32>
    %168 = tpu.matmul %165, %166, %cst_65 {dimension_numbers = #tpu.dot_dimension_numbers<[1], [1], [0], [0], [0, 0, 1, 0], [], []>} : vector<8x8xf32>, vector<16x8xf32>, vector<8x16xf32> -> vector<8x16xf32>
    %cst_66 = arith.constant dense<0xFF800000> : vector<8xf32>
    %169 = vector.multi_reduction <maximumf>, %168, %cst_66 [1] : vector<8x16xf32> to vector<8xf32>
    %170 = vector.shape_cast %169 : vector<8xf32> to vector<8x1xf32>
    %171 = vector.broadcast %170 : vector<8x1xf32> to vector<8x16xf32>
    %172 = arith.subf %168, %171 : vector<8x16xf32>
    %173 = math.exp %172 : vector<8x16xf32>
    %cst_67 = arith.constant dense<0.000000e+00> : vector<8xf32>
    %174 = vector.multi_reduction <add>, %173, %cst_67 [1] : vector<8x16xf32> to vector<8xf32>
    %175 = vector.shape_cast %174 : vector<8xf32> to vector<8x1xf32>
    %176 = tpu.reciprocal %175 {approx = true} : vector<8x1xf32> -> vector<8x1xf32>
    %177 = vector.broadcast %176 : vector<8x1xf32> to vector<8x16xf32>
    %178 = arith.mulf %173, %177 : vector<8x16xf32>
    %cst_68 = arith.constant dense<0.000000e+00> : vector<8x8xf32>
    %179 = tpu.matmul %178, %167, %cst_68 {dimension_numbers = #tpu.dot_dimension_numbers<[1], [0], [0], [1], [0, 0, 1, 1], [], []>} : vector<8x16xf32>, vector<16x8xf32>, vector<8x8xf32> -> vector<8x8xf32>
    %180 = vector.extract_strided_slice %155 {offsets = [0, 8], sizes = [8, 8], strides = [1, 1]} : vector<8x32xf32> to vector<8x8xf32>
    %181 = vector.extract_strided_slice %163 {offsets = [0, 8], sizes = [16, 8], strides = [1, 1]} : vector<16x32xf32> to vector<16x8xf32>
    %182 = vector.extract_strided_slice %164 {offsets = [0, 8], sizes = [16, 8], strides = [1, 1]} : vector<16x32xf32> to vector<16x8xf32>
    %cst_69 = arith.constant dense<0.000000e+00> : vector<8x16xf32>
    %183 = tpu.matmul %180, %181, %cst_69 {dimension_numbers = #tpu.dot_dimension_numbers<[1], [1], [0], [0], [0, 0, 1, 0], [], []>} : vector<8x8xf32>, vector<16x8xf32>, vector<8x16xf32> -> vector<8x16xf32>
    %cst_70 = arith.constant dense<0xFF800000> : vector<8xf32>
    %184 = vector.multi_reduction <maximumf>, %183, %cst_70 [1] : vector<8x16xf32> to vector<8xf32>
    %185 = vector.shape_cast %184 : vector<8xf32> to vector<8x1xf32>
    %186 = vector.broadcast %185 : vector<8x1xf32> to vector<8x16xf32>
    %187 = arith.subf %183, %186 : vector<8x16xf32>
    %188 = math.exp %187 : vector<8x16xf32>
    %cst_71 = arith.constant dense<0.000000e+00> : vector<8xf32>
    %189 = vector.multi_reduction <add>, %188, %cst_71 [1] : vector<8x16xf32> to vector<8xf32>
    %190 = vector.shape_cast %189 : vector<8xf32> to vector<8x1xf32>
    %191 = tpu.reciprocal %190 {approx = true} : vector<8x1xf32> -> vector<8x1xf32>
    %192 = vector.broadcast %191 : vector<8x1xf32> to vector<8x16xf32>
    %193 = arith.mulf %188, %192 : vector<8x16xf32>
    %cst_72 = arith.constant dense<0.000000e+00> : vector<8x8xf32>
    %194 = tpu.matmul %193, %182, %cst_72 {dimension_numbers = #tpu.dot_dimension_numbers<[1], [0], [0], [1], [0, 0, 1, 1], [], []>} : vector<8x16xf32>, vector<16x8xf32>, vector<8x8xf32> -> vector<8x8xf32>
    %195 = vector.extract_strided_slice %155 {offsets = [0, 16], sizes = [8, 8], strides = [1, 1]} : vector<8x32xf32> to vector<8x8xf32>
    %196 = vector.extract_strided_slice %163 {offsets = [0, 16], sizes = [16, 8], strides = [1, 1]} : vector<16x32xf32> to vector<16x8xf32>
    %197 = vector.extract_strided_slice %164 {offsets = [0, 16], sizes = [16, 8], strides = [1, 1]} : vector<16x32xf32> to vector<16x8xf32>
    %cst_73 = arith.constant dense<0.000000e+00> : vector<8x16xf32>
    %198 = tpu.matmul %195, %196, %cst_73 {dimension_numbers = #tpu.dot_dimension_numbers<[1], [1], [0], [0], [0, 0, 1, 0], [], []>} : vector<8x8xf32>, vector<16x8xf32>, vector<8x16xf32> -> vector<8x16xf32>
    %cst_74 = arith.constant dense<0xFF800000> : vector<8xf32>
    %199 = vector.multi_reduction <maximumf>, %198, %cst_74 [1] : vector<8x16xf32> to vector<8xf32>
    %200 = vector.shape_cast %199 : vector<8xf32> to vector<8x1xf32>
    %201 = vector.broadcast %200 : vector<8x1xf32> to vector<8x16xf32>
    %202 = arith.subf %198, %201 : vector<8x16xf32>
    %203 = math.exp %202 : vector<8x16xf32>
    %cst_75 = arith.constant dense<0.000000e+00> : vector<8xf32>
    %204 = vector.multi_reduction <add>, %203, %cst_75 [1] : vector<8x16xf32> to vector<8xf32>
    %205 = vector.shape_cast %204 : vector<8xf32> to vector<8x1xf32>
    %206 = tpu.reciprocal %205 {approx = true} : vector<8x1xf32> -> vector<8x1xf32>
    %207 = vector.broadcast %206 : vector<8x1xf32> to vector<8x16xf32>
    %208 = arith.mulf %203, %207 : vector<8x16xf32>
    %cst_76 = arith.constant dense<0.000000e+00> : vector<8x8xf32>
    %209 = tpu.matmul %208, %197, %cst_76 {dimension_numbers = #tpu.dot_dimension_numbers<[1], [0], [0], [1], [0, 0, 1, 1], [], []>} : vector<8x16xf32>, vector<16x8xf32>, vector<8x8xf32> -> vector<8x8xf32>
    %210 = vector.extract_strided_slice %155 {offsets = [0, 24], sizes = [8, 8], strides = [1, 1]} : vector<8x32xf32> to vector<8x8xf32>
    %211 = vector.extract_strided_slice %163 {offsets = [0, 24], sizes = [16, 8], strides = [1, 1]} : vector<16x32xf32> to vector<16x8xf32>
    %212 = vector.extract_strided_slice %164 {offsets = [0, 24], sizes = [16, 8], strides = [1, 1]} : vector<16x32xf32> to vector<16x8xf32>
    %cst_77 = arith.constant dense<0.000000e+00> : vector<8x16xf32>
    %213 = tpu.matmul %210, %211, %cst_77 {dimension_numbers = #tpu.dot_dimension_numbers<[1], [1], [0], [0], [0, 0, 1, 0], [], []>} : vector<8x8xf32>, vector<16x8xf32>, vector<8x16xf32> -> vector<8x16xf32>
    %cst_78 = arith.constant dense<0xFF800000> : vector<8xf32>
    %214 = vector.multi_reduction <maximumf>, %213, %cst_78 [1] : vector<8x16xf32> to vector<8xf32>
    %215 = vector.shape_cast %214 : vector<8xf32> to vector<8x1xf32>
    %216 = vector.broadcast %215 : vector<8x1xf32> to vector<8x16xf32>
    %217 = arith.subf %213, %216 : vector<8x16xf32>
    %218 = math.exp %217 : vector<8x16xf32>
    %cst_79 = arith.constant dense<0.000000e+00> : vector<8xf32>
    %219 = vector.multi_reduction <add>, %218, %cst_79 [1] : vector<8x16xf32> to vector<8xf32>
    %220 = vector.shape_cast %219 : vector<8xf32> to vector<8x1xf32>
    %221 = tpu.reciprocal %220 {approx = true} : vector<8x1xf32> -> vector<8x1xf32>
    %222 = vector.broadcast %221 : vector<8x1xf32> to vector<8x16xf32>
    %223 = arith.mulf %218, %222 : vector<8x16xf32>
    %cst_80 = arith.constant dense<0.000000e+00> : vector<8x8xf32>
    %224 = tpu.matmul %223, %212, %cst_80 {dimension_numbers = #tpu.dot_dimension_numbers<[1], [0], [0], [1], [0, 0, 1, 1], [], []>} : vector<8x16xf32>, vector<16x8xf32>, vector<8x8xf32> -> vector<8x8xf32>
    %225 = tpu.concatenate %179, %194, %209, %224 in 1 : vector<8x8xf32>, vector<8x8xf32>, vector<8x8xf32>, vector<8x8xf32> -> vector<8x32xf32>
    %c0_81 = arith.constant 0 : index
    %c0_82 = arith.constant 0 : index
    %c0_83 = arith.constant 0 : index
    %226 = vector.load %arg13[%c0_81, %c0_82, %c0_83] : memref<1x32x32xf32, #tpu.memory_space<vmem>>, vector<1x32x32xf32>
    %227 = vector.shape_cast %226 : vector<1x32x32xf32> to vector<32x32xf32>
    %cst_84 = arith.constant dense<0.000000e+00> : vector<8x32xf32>
    %228 = tpu.matmul %225, %227, %cst_84 {dimension_numbers = #tpu.dot_dimension_numbers<[1], [0], [0], [1], [0, 0, 1, 1], [], []>} : vector<8x32xf32>, vector<32x32xf32>, vector<8x32xf32> -> vector<8x32xf32>
    %229 = arith.addf %122, %228 : vector<8x32xf32>
    %c0_85 = arith.constant 0 : index
    %c0_86 = arith.constant 0 : index
    %c0_87 = arith.constant 0 : index
    %230 = vector.load %arg14[%c0_85, %c0_86, %c0_87] : memref<1x1x32xf32, #tpu.memory_space<vmem>>, vector<1x1x32xf32>
    %231 = vector.shape_cast %230 : vector<1x1x32xf32> to vector<1x32xf32>
    %232 = vector.broadcast %231 : vector<1x32xf32> to vector<8x32xf32>
    %233 = arith.addf %229, %232 : vector<8x32xf32>
    %234 = vector.extract_strided_slice %7 {offsets = [4, 0], sizes = [1, 32], strides = [1, 1]} : vector<6x32xf32> to vector<1x32xf32>
    %235 = vector.extract_strided_slice %7 {offsets = [5, 0], sizes = [1, 32], strides = [1, 1]} : vector<6x32xf32> to vector<1x32xf32>
    %cst_88 = arith.constant dense<0.000000e+00> : vector<8xf32>
    %236 = vector.multi_reduction <add>, %233, %cst_88 [1] : vector<8x32xf32> to vector<8xf32>
    %237 = vector.shape_cast %236 : vector<8xf32> to vector<8x1xf32>
    %cst_89 = arith.constant 3.200000e+01 : f32
    %238 = vector.broadcast %cst_89 : f32 to vector<8x1xf32>
    %239 = arith.divf %237, %238 : vector<8x1xf32>
    %240 = vector.broadcast %239 : vector<8x1xf32> to vector<8x32xf32>
    %241 = arith.subf %233, %240 : vector<8x32xf32>
    %242 = arith.mulf %241, %241 : vector<8x32xf32>
    %cst_90 = arith.constant dense<0.000000e+00> : vector<8xf32>
    %243 = vector.multi_reduction <add>, %242, %cst_90 [1] : vector<8x32xf32> to vector<8xf32>
    %244 = vector.shape_cast %243 : vector<8xf32> to vector<8x1xf32>
    %cst_91 = arith.constant 3.200000e+01 : f32
    %245 = vector.broadcast %cst_91 : f32 to vector<8x1xf32>
    %246 = arith.divf %244, %245 : vector<8x1xf32>
    %247 = vector.broadcast %239 : vector<8x1xf32> to vector<8x32xf32>
    %248 = arith.subf %233, %247 : vector<8x32xf32>
    %cst_92 = arith.constant 9.99999974E-6 : f32
    %249 = vector.broadcast %cst_92 : f32 to vector<8x1xf32>
    %250 = arith.addf %246, %249 : vector<8x1xf32>
    %251 = math.rsqrt %250 : vector<8x1xf32>
    %252 = vector.broadcast %251 : vector<8x1xf32> to vector<8x32xf32>
    %253 = arith.mulf %248, %252 : vector<8x32xf32>
    %254 = vector.broadcast %234 : vector<1x32xf32> to vector<8x32xf32>
    %255 = arith.mulf %253, %254 : vector<8x32xf32>
    %256 = vector.broadcast %235 : vector<1x32xf32> to vector<8x32xf32>
    %257 = arith.addf %255, %256 : vector<8x32xf32>
    %c0_93 = arith.constant 0 : index
    %c0_94 = arith.constant 0 : index
    %c0_95 = arith.constant 0 : index
    %258 = vector.load %arg15[%c0_93, %c0_94, %c0_95] : memref<1x32x128xf32, #tpu.memory_space<vmem>>, vector<1x32x128xf32>
    %259 = vector.shape_cast %258 : vector<1x32x128xf32> to vector<32x128xf32>
    %cst_96 = arith.constant dense<0.000000e+00> : vector<8x128xf32>
    %260 = tpu.matmul %257, %259, %cst_96 {dimension_numbers = #tpu.dot_dimension_numbers<[1], [0], [0], [1], [0, 0, 1, 1], [], []>} : vector<8x32xf32>, vector<32x128xf32>, vector<8x128xf32> -> vector<8x128xf32>
    %c0_97 = arith.constant 0 : index
    %c0_98 = arith.constant 0 : index
    %c0_99 = arith.constant 0 : index
    %261 = vector.load %arg16[%c0_97, %c0_98, %c0_99] : memref<1x1x128xf32, #tpu.memory_space<vmem>>, vector<1x1x128xf32>
    %262 = vector.shape_cast %261 : vector<1x1x128xf32> to vector<1x128xf32>
    %263 = vector.broadcast %262 : vector<1x128xf32> to vector<8x128xf32>
    %264 = arith.addf %260, %263 : vector<8x128xf32>
    %cst_100 = arith.constant 5.000000e-01 : f32
    %265 = vector.broadcast %cst_100 : f32 to vector<8x128xf32>
    %266 = arith.mulf %265, %264 : vector<8x128xf32>
    %cst_101 = arith.constant 4.471500e-02 : f32
    %267 = vector.broadcast %cst_101 : f32 to vector<8x128xf32>
    %268 = arith.mulf %267, %264 : vector<8x128xf32>
    %269 = arith.mulf %268, %264 : vector<8x128xf32>
    %270 = arith.mulf %269, %264 : vector<8x128xf32>
    %271 = arith.addf %264, %270 : vector<8x128xf32>
    %cst_102 = arith.constant 0.797884583 : f32
    %272 = vector.broadcast %cst_102 : f32 to vector<8x128xf32>
    %273 = arith.mulf %272, %271 : vector<8x128xf32>
    %274 = math.tanh %273 : vector<8x128xf32>
    %cst_103 = arith.constant 1.000000e+00 : f32
    %275 = vector.broadcast %cst_103 : f32 to vector<8x128xf32>
    %276 = arith.addf %275, %274 : vector<8x128xf32>
    %277 = arith.mulf %266, %276 : vector<8x128xf32>
    %c0_104 = arith.constant 0 : index
    %c0_105 = arith.constant 0 : index
    %c0_106 = arith.constant 0 : index
    %278 = vector.load %arg17[%c0_104, %c0_105, %c0_106] : memref<1x128x32xf32, #tpu.memory_space<vmem>>, vector<1x128x32xf32>
    %279 = vector.shape_cast %278 : vector<1x128x32xf32> to vector<128x32xf32>
    %cst_107 = arith.constant dense<0.000000e+00> : vector<8x32xf32>
    %280 = tpu.matmul %277, %279, %cst_107 {dimension_numbers = #tpu.dot_dimension_numbers<[1], [0], [0], [1], [0, 0, 1, 1], [], []>} : vector<8x128xf32>, vector<128x32xf32>, vector<8x32xf32> -> vector<8x32xf32>
    %281 = arith.addf %233, %280 : vector<8x32xf32>
    %c0_108 = arith.constant 0 : index
    %c0_109 = arith.constant 0 : index
    %c0_110 = arith.constant 0 : index
    %282 = vector.load %arg18[%c0_108, %c0_109, %c0_110] : memref<1x1x32xf32, #tpu.memory_space<vmem>>, vector<1x1x32xf32>
    %283 = vector.shape_cast %282 : vector<1x1x32xf32> to vector<1x32xf32>
    %284 = vector.broadcast %283 : vector<1x32xf32> to vector<8x32xf32>
    %285 = arith.addf %281, %284 : vector<8x32xf32>
    %c0_111 = arith.constant 0 : index
    %c0_112 = arith.constant 0 : index
    %286 = vector.load %arg22[%c0_111, %c0_112] : memref<8x32xf32, #tpu.memory_space<vmem>>, vector<8x32xf32>
    tpu.vector_store %arg22[%c0_111, %c0_112], %285 {strides = array<i32>} : memref<8x32xf32, #tpu.memory_space<vmem>>, vector<8x32xf32>,
    %c1_i32 = arith.constant 1 : i32
    %287 = arith.cmpi eq, %arg1, %c1_i32 : i32
    %288 = arith.extui %287 : i1 to i32
    %c0_i32_113 = arith.constant 0 : i32
    %289 = arith.cmpi ne, %288, %c0_i32_113 : i32
    scf.if %289 {
      %c0_114 = arith.constant 0 : index
      %c0_115 = arith.constant 0 : index
      %290 = vector.load %arg19[%c0_114, %c0_115] : memref<2x32xf32, #tpu.memory_space<vmem>>, vector<2x32xf32>
      %291 = vector.extract_strided_slice %290 {offsets = [0, 0], sizes = [1, 32], strides = [1, 1]} : vector<2x32xf32> to vector<1x32xf32>
      %292 = vector.extract_strided_slice %290 {offsets = [1, 0], sizes = [1, 32], strides = [1, 1]} : vector<2x32xf32> to vector<1x32xf32>
      %cst_116 = arith.constant dense<0.000000e+00> : vector<8xf32>
      %293 = vector.multi_reduction <add>, %285, %cst_116 [1] : vector<8x32xf32> to vector<8xf32>
      %294 = vector.shape_cast %293 : vector<8xf32> to vector<8x1xf32>
      %cst_117 = arith.constant 3.200000e+01 : f32
      %295 = vector.broadcast %cst_117 : f32 to vector<8x1xf32>
      %296 = arith.divf %294, %295 : vector<8x1xf32>
      %297 = vector.broadcast %296 : vector<8x1xf32> to vector<8x32xf32>
      %298 = arith.subf %285, %297 : vector<8x32xf32>
      %299 = arith.mulf %298, %298 : vector<8x32xf32>
      %cst_118 = arith.constant dense<0.000000e+00> : vector<8xf32>
      %300 = vector.multi_reduction <add>, %299, %cst_118 [1] : vector<8x32xf32> to vector<8xf32>
      %301 = vector.shape_cast %300 : vector<8xf32> to vector<8x1xf32>
      %cst_119 = arith.constant 3.200000e+01 : f32
      %302 = vector.broadcast %cst_119 : f32 to vector<8x1xf32>
      %303 = arith.divf %301, %302 : vector<8x1xf32>
      %304 = vector.broadcast %296 : vector<8x1xf32> to vector<8x32xf32>
      %305 = arith.subf %285, %304 : vector<8x32xf32>
      %cst_120 = arith.constant 9.99999974E-6 : f32
      %306 = vector.broadcast %cst_120 : f32 to vector<8x1xf32>
      %307 = arith.addf %303, %306 : vector<8x1xf32>
      %308 = math.rsqrt %307 : vector<8x1xf32>
      %309 = vector.broadcast %308 : vector<8x1xf32> to vector<8x32xf32>
      %310 = arith.mulf %305, %309 : vector<8x32xf32>
      %311 = vector.broadcast %291 : vector<1x32xf32> to vector<8x32xf32>
      %312 = arith.mulf %310, %311 : vector<8x32xf32>
      %313 = vector.broadcast %292 : vector<1x32xf32> to vector<8x32xf32>
      %314 = arith.addf %312, %313 : vector<8x32xf32>
      %c0_121 = arith.constant 0 : index
      %c0_122 = arith.constant 0 : index
      %315 = vector.load %arg20[%c0_121, %c0_122] : memref<32x128xf32, #tpu.memory_space<vmem>>, vector<32x128xf32>
      %cst_123 = arith.constant dense<0.000000e+00> : vector<8x128xf32>
      %316 = tpu.matmul %314, %315, %cst_123 {dimension_numbers = #tpu.dot_dimension_numbers<[1], [0], [0], [1], [0, 0, 1, 1], [], []>} : vector<8x32xf32>, vector<32x128xf32>, vector<8x128xf32> -> vector<8x128xf32>
      %c0_124 = arith.constant 0 : index
      %c0_125 = arith.constant 0 : index
      %c0_126 = arith.constant 0 : index
      %317 = vector.load %arg21[%c0_124, %c0_125, %c0_126] : memref<1x8x128xf32, #tpu.memory_space<vmem>>, vector<1x8x128xf32>
      %318 = vector.shape_cast %317 : vector<1x8x128xf32> to vector<8x128xf32>
      %319 = vector.shape_cast %316 : vector<8x128xf32> to vector<1x8x128xf32>
      tpu.vector_store %arg21[%c0_124, %c0_125, %c0_126], %319 {strides = array<i32>} : memref<1x8x128xf32, #tpu.memory_space<vmem>>, vector<1x8x128xf32>,
    } else {
    }
    return
  }
  func.func @transform_0(%arg0: i32, %arg1: i32) -> (i32, i32, i32) {
    %c0_i32 = arith.constant 0 : i32
    %c0_i32_0 = arith.constant 0 : i32
    %c0_i32_1 = arith.constant 0 : i32
    return %arg0, %c0_i32, %c0_i32_0 : i32, i32, i32
  }
  func.func @transform_1(%arg0: i32, %arg1: i32) -> (i32, i32, i32) {
    %c0_i32 = arith.constant 0 : i32
    %c0_i32_0 = arith.constant 0 : i32
    %c0_i32_1 = arith.constant 0 : i32
    return %arg0, %c0_i32, %c0_i32_0 : i32, i32, i32
  }
  func.func @transform_2(%arg0: i32, %arg1: i32) -> (i32, i32, i32) {
    %c0_i32 = arith.constant 0 : i32
    %c0_i32_0 = arith.constant 0 : i32
    %c0_i32_1 = arith.constant 0 : i32
    return %arg1, %c0_i32, %c0_i32_0 : i32, i32, i32
  }
  func.func @transform_3(%arg0: i32, %arg1: i32) -> (i32, i32, i32) {
    %c0_i32 = arith.constant 0 : i32
    %c0_i32_0 = arith.constant 0 : i32
    %c0_i32_1 = arith.constant 0 : i32
    return %arg1, %c0_i32, %c0_i32_0 : i32, i32, i32
  }
  func.func @transform_4(%arg0: i32, %arg1: i32) -> (i32, i32, i32) {
    %c0_i32 = arith.constant 0 : i32
    %c0_i32_0 = arith.constant 0 : i32
    %c0_i32_1 = arith.constant 0 : i32
    return %arg1, %c0_i32, %c0_i32_0 : i32, i32, i32
  }
  func.func @transform_5(%arg0: i32, %arg1: i32) -> (i32, i32, i32) {
    %c0_i32 = arith.constant 0 : i32
    %c0_i32_0 = arith.constant 0 : i32
    %c0_i32_1 = arith.constant 0 : i32
    return %arg1, %c0_i32, %c0_i32_0 : i32, i32, i32
  }
  func.func @transform_6(%arg0: i32, %arg1: i32) -> (i32, i32, i32) {
    %c0_i32 = arith.constant 0 : i32
    %c0_i32_0 = arith.constant 0 : i32
    %c0_i32_1 = arith.constant 0 : i32
    return %arg1, %c0_i32, %c0_i32_0 : i32, i32, i32
  }
  func.func @transform_7(%arg0: i32, %arg1: i32) -> (i32, i32, i32) {
    %c0_i32 = arith.constant 0 : i32
    %c0_i32_0 = arith.constant 0 : i32
    %c0_i32_1 = arith.constant 0 : i32
    return %arg1, %c0_i32, %c0_i32_0 : i32, i32, i32
  }
  func.func @transform_8(%arg0: i32, %arg1: i32) -> (i32, i32, i32) {
    %c0_i32 = arith.constant 0 : i32
    %c0_i32_0 = arith.constant 0 : i32
    %c0_i32_1 = arith.constant 0 : i32
    return %arg1, %c0_i32, %c0_i32_0 : i32, i32, i32
  }
  func.func @transform_9(%arg0: i32, %arg1: i32) -> (i32, i32, i32) {
    %c0_i32 = arith.constant 0 : i32
    %c0_i32_0 = arith.constant 0 : i32
    %c0_i32_1 = arith.constant 0 : i32
    return %arg1, %c0_i32, %c0_i32_0 : i32, i32, i32
  }
  func.func @transform_10(%arg0: i32, %arg1: i32) -> (i32, i32, i32) {
    %c0_i32 = arith.constant 0 : i32
    %c0_i32_0 = arith.constant 0 : i32
    %c0_i32_1 = arith.constant 0 : i32
    return %arg1, %c0_i32, %c0_i32_0 : i32, i32, i32
  }
  func.func @transform_11(%arg0: i32, %arg1: i32) -> (i32, i32, i32) {
    %c0_i32 = arith.constant 0 : i32
    %c0_i32_0 = arith.constant 0 : i32
    %c0_i32_1 = arith.constant 0 : i32
    return %arg1, %c0_i32, %c0_i32_0 : i32, i32, i32
  }
  func.func @transform_12(%arg0: i32, %arg1: i32) -> (i32, i32, i32) {
    %c0_i32 = arith.constant 0 : i32
    %c0_i32_0 = arith.constant 0 : i32
    %c0_i32_1 = arith.constant 0 : i32
    return %arg1, %c0_i32, %c0_i32_0 : i32, i32, i32
  }
  func.func @transform_13(%arg0: i32, %arg1: i32) -> (i32, i32, i32) {
    %c0_i32 = arith.constant 0 : i32
    %c0_i32_0 = arith.constant 0 : i32
    %c0_i32_1 = arith.constant 0 : i32
    return %arg1, %c0_i32, %c0_i32_0 : i32, i32, i32
  }
  func.func @transform_14(%arg0: i32, %arg1: i32) -> (i32, i32, i32) {
    %c0_i32 = arith.constant 0 : i32
    %c0_i32_0 = arith.constant 0 : i32
    %c0_i32_1 = arith.constant 0 : i32
    return %arg1, %c0_i32, %c0_i32_0 : i32, i32, i32
  }
  func.func @transform_15(%arg0: i32, %arg1: i32) -> (i32, i32, i32) {
    %c0_i32 = arith.constant 0 : i32
    %c0_i32_0 = arith.constant 0 : i32
    %c0_i32_1 = arith.constant 0 : i32
    return %arg1, %c0_i32, %c0_i32_0 : i32, i32, i32
  }
  func.func @transform_16(%arg0: i32, %arg1: i32) -> (i32, i32, i32) {
    %c0_i32 = arith.constant 0 : i32
    %c0_i32_0 = arith.constant 0 : i32
    %c0_i32_1 = arith.constant 0 : i32
    return %arg1, %c0_i32, %c0_i32_0 : i32, i32, i32
  }
  func.func @transform_17(%arg0: i32, %arg1: i32) -> (i32, i32) {
    %c0_i32 = arith.constant 0 : i32
    %c0_i32_0 = arith.constant 0 : i32
    %c0_i32_1 = arith.constant 0 : i32
    return %c0_i32, %c0_i32_0 : i32, i32
  }
  func.func @transform_18(%arg0: i32, %arg1: i32) -> (i32, i32) {
    %c0_i32 = arith.constant 0 : i32
    %c0_i32_0 = arith.constant 0 : i32
    %c0_i32_1 = arith.constant 0 : i32
    return %c0_i32, %c0_i32_0 : i32, i32
  }
  func.func @transform_19(%arg0: i32, %arg1: i32) -> (i32, i32, i32) {
    %c0_i32 = arith.constant 0 : i32
    %c0_i32_0 = arith.constant 0 : i32
    %c0_i32_1 = arith.constant 0 : i32
    return %arg0, %c0_i32, %c0_i32_0 : i32, i32, i32
  }
}

</mosaic_0001>

<bundles_post_ra>
// kernel: decoder_logits.1
= control target key start
LH: loop header
LB: loop body
LE: loop exit
PB: predicated region body
PF: predicated region fallthrough
CT: control target
= control target key end

     0   :  { %s4754_s0 = inlined_call_operand.vmem [shape: f32[2,8,32], index: 0, kind: input, shape index: {}]   ;;  %s4755_s1 = inlined_call_operand.vmem [shape: f32[2,16,32], index: 1, kind: input, shape index: {}]   ;;  %s4756_s2 = inlined_call_operand.vmem [shape: f32[2,6,32], index: 2, kind: input, shape index: {}]   ;;  %s4757_s3 = inlined_call_operand.vmem [shape: f32[2,32,96], index: 3, kind: input, shape index: {}]   ;;  %s4758_s4 = inlined_call_operand.vmem [shape: f32[2,1,96], index: 4, kind: input, shape index: {}]   ;;  %s4759_s5 = inlined_call_operand.vmem [shape: f32[2,32,32], index: 5, kind: input, shape index: {}]   ;;  %s4760_s6 = inlined_call_operand.vmem [shape: f32[2,1,32], index: 6, kind: input, shape index: {}]   ;;  %s4761_s7 = inlined_call_operand.vmem [shape: f32[2,32,32], index: 7, kind: input, shape index: {}]   ;;  %s4762_s8 = inlined_call_operand.vmem [shape: f32[2,1,32], index: 8, kind: input, shape index: {}]   ;;  %s4763_s9 = inlined_call_operand.vmem [shape: f32[2,32,64], index: 9, kind: input, shape index: {}]   ;;  %s4764_s10 = inlined_call_operand.vmem [shape: f32[2,1,64], index: 10, kind: input, shape index: {}]   ;;  %s4765_s11 = inlined_call_operand.vmem [shape: f32[2,32,32], index: 11, kind: input, shape index: {}]   ;;  %s4766_s12 = inlined_call_operand.vmem [shape: f32[2,1,32], index: 12, kind: input, shape index: {}]   ;;  %s4767_s13 = inlined_call_operand.vmem [shape: f32[2,32,128], index: 13, kind: input, shape index: {}]   ;;  %s4768_s14 = inlined_call_operand.vmem [shape: f32[2,1,128], index: 14, kind: input, shape index: {}]   ;;  %s4769_s15 = inlined_call_operand.vmem [shape: f32[2,128,32], index: 15, kind: input, shape index: {}]   ;;  %s4770_s16 = inlined_call_operand.vmem [shape: f32[2,1,32], index: 16, kind: input, shape index: {}]   ;;  %s4771_s17 = inlined_call_operand.vmem [shape: f32[2,32], index: 17, kind: input, shape index: {}]   ;;  %s4772_s18 = inlined_call_operand.vmem [shape: f32[32,128], index: 18, kind: input, shape index: {}]   ;;  %s4773_s19 = inlined_call_operand.hbm [shape: f32[2,8,128], index: 19, kind: output, shape index: {}]  }
   0x1   :  { %4792 = sst [smem:[#allocation21_spill]] %s4754_s0 }
   0x2   :  { %4793 = sst [smem:[#allocation22_spill]] %s4755_s1 }
   0x3   :  { %4794 = sst [smem:[#allocation23_spill]] %s4756_s2 }
   0x4   :  { %4795 = sst [smem:[#allocation24_spill]] %s4757_s3 }
   0x5   :  { %4796 = sst [smem:[#allocation25_spill]] %s4759_s5 }
   0x6   :  { %4797 = sst [smem:[#allocation26_spill]] %s4761_s7 }
   0x7   :  { %4798 = sst [smem:[#allocation27_spill]] %s4762_s8 }
   0x8   :  { %4799 = sst [smem:[#allocation28_spill]] %s4763_s9 }
   0x9   :  { %4800 = sst [smem:[#allocation29_spill]] %s4764_s10 }
   0xa   :  { %4801 = sst [smem:[#allocation30_spill]] %s4765_s11 }
   0xb   :  { %4802 = sst [smem:[#allocation31_spill]] %s4768_s14 }
   0xc   :  { %4803 = sst [smem:[#allocation32_spill]] %s4769_s15 }
   0xd   :  { %4804 = sst [smem:[#allocation33_spill]] %s4770_s16 }
   0xe   :  { %4805 = sst [smem:[#allocation34_spill]] %s4771_s17 }
   0xf   :  { %4806 = sst [smem:[#allocation35_spill]] %s4772_s18 }
  0x10   :  { %4807 = sst [smem:[#allocation36_spill]] %s4773_s19 }
  0x11   :  { %24 = vsyncpa [#allocation4], 0 }
  0x12   :  { %26 = vsyncpa [#allocation4 + $0x1], 0  ;;  %s4198_s0 = smov 0   ;;  %s4200_s30 = smov 0  }
  0x13   :  { %s4202_s20 = smov 0   ;;  %s4204_s21 = smov 0  }
  0x14   :  { %s4206_s1 = smov 0   ;;  %s4208_s22 = smov 0  }
  0x15   :  { %s4210_s2 = smov 0   ;;  %s4212_s23 = smov 0  }
  0x16 LB: > { %4808 = sst [smem:[#allocation6_spill]] %s4047_s0  ;;  %s3335_s24 = sadd.s32 4294967295, %s4075_s23   ;;  %s4075_s23 = sphi %s4212_s23, %s32_s23   ;;  %s4071_s2 = sphi %s4210_s2, %s4869_s2   ;;  %s4067_s22 = sphi %s4208_s22, %s4868_s22   ;;  %s4063_s1 = sphi %s4206_s1, %s4867_s1   ;;  %s4059_s21 = sphi %s4204_s21, %s4866_s21   ;;  %s4055_s20 = sphi %s4202_s20, %s4865_s20   ;;  %s4051_s30 = sphi %s4200_s30, %s4864_s30   ;;  %s4047_s0 = sphi %s4198_s0, %s4863_s0  }
  0x17   : > { %4809 = sst [smem:[#allocation7_spill]] %s4051_s30  ;;  %s3336_s25 = sadd.s32 4294967294, %s4075_s23  }
  0x18   : > { %4810 = sst [smem:[#allocation8_spill]] %s4055_s20  ;;  %s41_s3 = sadd.s32 1, %s4067_s22 }
  0x19   : > { %4811 = sst [smem:[#allocation9_spill]] %s4059_s21  ;;  %p42_p0 = scmp.ge.s32.totalorder %s41_s3, 2 }
  0x1a   : > { %4812 = sst [smem:[#allocation10_spill]] %s4063_s1  ;;  %s44_s26 = sadd.s32 1, %s4071_s2 }
  0x1b   : > { %4813 = sst [smem:[#allocation11_spill]] %s4067_s22  ;;  %p545_p1 = scmp.ne.s32.totalorder %s4055_s20, %s4051_s30 }
  0x1c   : > { %4814 = sst [smem:[#allocation12_spill]] %s4071_s2  ;;  %p546_p2 = scmp.eq.s32.totalorder %s3335_s24, 3 }
  0x1d   : > { %4815 = sst [smem:[#allocation13_spill]] %s4075_s23  ;;  %s4871_s3 = smov (%p42_p0, %s41_s3), 0 }
  0x1e   : > { %4816 = sst [smem:[#allocation14_spill]] %s4871_s3  ;;  %s4873_s26 = smov (!%p42_p0, %s44_s26), %s4071_s2 }
  0x1f   : > { %p4247_p3 = por %p546_p2, %p545_p1  ;;  %p551_p4 = scmp.ne.s32.totalorder %s4051_s30, %s4047_s0 }
  0x20   : > { %p46_p5 = scmp.ge.s32.totalorder %s4873_s26, 2  ;;  %p552_p6 = scmp.eq.s32.totalorder %s3336_s25, 3 }
  0x21   : > { %s4817_s27 = scalar_select %p4247_p3, 1, 0 }
  0x22   : > { %p3339_p7 = scmp.ge.s32.totalorder %s4075_s23, 1  ;;  %p696_p8 = scmp.lt.s32.totalorder %s4075_s23, 5 }
  0x23   : > { %4818 = sst [smem:[#allocation15_spill]] %s4817_s27  ;;  %s4875_s26 = smov (%p46_p5, %s4873_s26), 0 }
  0x24   : > { %4819 = sst [smem:[#allocation16_spill]] %s4875_s26  ;;  %p4257_p9 = por %p552_p6, %p551_p4 }
  0x25   : > { %p697_p10 = pnand %p3339_p7, %p696_p8  ;;  %s532_s29 = ssub.s32 %s4071_s2, %s4875_s26 }
  0x26   : > { %s4820_s28 = scalar_select %p4257_p9, 1, 0 }
  0x27   : > { %s535_s24 = sadd.s32 1, %s4055_s20  ;;  %p533_p11 = scmp.eq.s32.totalorder %s532_s29, 0 }
  0x28   : > { %4821 = sst [smem:[#allocation17_spill]] %s4820_s28  ;;  %700 = sbr.rel (%p697_p10) target bundleno = 5919 (0x171f), region = 96 }
  0x29   : > { %s4265_s3 = scalar_select %p533_p11, %s4055_s20, %s535_s24  }
  0x2b   : > { %4822 = sst [smem:[#allocation18_spill]] %s4265_s3 }
  0x2f   : > { %s4782_s25 = sand.u32 1, %s4051_s30   ;;  %p816_p12 = scmp.lt.s32.totalorder %s4063_s1, 1 }
  0x30   : > { %s4271_s22 = sshll.u32 %s4782_s25, 3  ;;  %p825_p13 = scmp.lt.s32.totalorder %s4059_s21, 1 }
  0x31   : > { %s817_s28 = scalar_select %p816_p12, %s4063_s1, 1 }
  0x32   : > { %s4276_s0 = scalar_select %p825_p13, %s4059_s21, 1 }
  0x33   : > { %s3341_s29 = sshll.u32 %s817_s28, 3  ;;  %s3408_s24 = sshll.u32 %s817_s28, 4 }
  0x34   : > { %s4823_s3 = sld [smem:[#allocation21_spill]]  ;;  %s4824_s19 = sld [smem:[#allocation22_spill]] }
  0x35   : > { %s3344_s30 = sshll.u32 %s4276_s0, 3  ;;  %s3409_s1 = sshll.u32 %s4276_s0, 5 }
  0x36   : > { %s4826_s21 = sld [smem:[#allocation23_spill]]  ;;  %s4827_s14 = sld [smem:[#allocation24_spill]] }
  0x37   : > { %s4828_s5 = sld [smem:[#allocation25_spill]]  ;;  %s4829_s7 = sld [smem:[#allocation26_spill]] }
  0x38   : > { %s4831_s9 = sld [smem:[#allocation28_spill]]  ;;  %s4833_s11 = sld [smem:[#allocation30_spill]] }
  0x39   : > { %s3415_s26 = sshll.u32 %s4276_s0, 7  ;;  %s4836_s10 = sld [smem:[#allocation32_spill]] }
  0x3a   : > { %s819_s20 = scalar_lea.vmem %s4823_s3, %s3341_s29  ;;  %s4284_s27 = scalar_lea.vmem %s4824_s19, %s3408_s24 }
  0x3b   : > { %4825 = sst [smem:[#allocation19_spill]] %s4284_s27  ;;  %s4341_s27 = scalar_lea.vmem %s4767_s13, %s3409_s1 }
  0x3c   : > { %s4291_s16 = scalar_lea.vmem %s4826_s21, %s3344_s30  ;;  %s4296_s2 = scalar_lea.vmem %s4827_s14, %s3409_s1 }
  0x3d   : > { %s4305_s29 = scalar_lea.vmem %s4828_s5, %s3409_s1  ;;  %s4314_s15 = scalar_lea.vmem %s4829_s7, %s3409_s1 }
  0x3e   : > { %s4323_s19 = scalar_lea.vmem %s4831_s9, %s3409_s1  ;;  %s4332_s18 = scalar_lea.vmem %s4833_s11, %s3409_s1 }
  0x3f   : > { %4834 = sst [smem:[#allocation20_spill]] %s4332_s18  ;;  %s4835_s9 = sld [smem:[#allocation31_spill]] }
  0x40   : > { %s4351_s24 = scalar_lea.vmem %s4836_s10, %s3415_s26  ;;  %s4837_s18 = sld [smem:[#allocation33_spill]] }
  0x41   : > { %s815_s21 = scalar_lea.vmem [#allocation3], %s4271_s22  ;;  %s4838_s7 = sld [smem:[#allocation9_spill]] }
  0x45   : > { %s876_s8 = scalar_lea.vmem %s4835_s9, %s4276_s0 }
  0x46   : > { %s884_s30 = scalar_lea.vmem %s4837_s18, %s4276_s0 }
  0x47   : > { %p3359_p0 = scmp.ne.s32.totalorder %s4838_s7, 0 }
  0x48   : > { %v889_v0 = vld [vmem:[%s819_s20] sm:$0xff] (!%p3359_p0)  ;;  %vm890_vm0 = vcmask (!%p3359_p0), 261120  }
  0x49   : > { %888 = sbr.rel (%p3359_p0) target bundleno = 80 (0x50), region = 100  ;;  %891 = vst.msk [vmem:[#allocation2] sm:$0xff] (!%p3359_p0), %vm890_vm0, %v889_v0 }
  0x50 PF: > { %v4359_v1 = vld [vmem:[#allocation2] sm:$0xff]  ;;  %vm902_vm1 = vcmask 261120   ;;  %v928_v9 = vld [vmem:[%s4296_s2 + $0x8] sm:$0xff]  ;;  %v929_v10 = vld [vmem:[%s4296_s2 + $0x10] sm:$0xff]  ;;  %v4077_v11 = vmov 0.0|0.0   ;;  %vm4078_vm2 = vmmov 0   ;;  %v896_v18 = vlaneseq  ;;  %s4839_s9 = scalar_lea.vmem %s4758_s4, %s4276_s0  ;;  %s4840_s7 = scalar_lea.vmem %s4760_s6, %s4276_s0 }
  0x51   : > { %v903_v2 = vsel %vm902_vm1, %v4359_v1, 0.0  ;;  %v927_v8 = vld [vmem:[%s4296_s2] sm:$0xff]  ;;  %3717 = vmatprep.subr.bf16.mxu1 %v4077_v11  ;;  %v930_v13 = vld [vmem:[%s4296_s2 + $0x18] sm:$0xff]  ;;  %v4079_v14 = vmov 0.0   ;;  %s4080_s10 = smov 96   ;;  %s4081_s11 = smov 120  }
  0x52   : > { %904 = vadd.xlane.f32.xlu0 %v903_v2  ;;  %v3718_v12 = vpack.c.bf16 %v928_v9, %v927_v8  ;;  %3517 = vmatprep.mubr.msk.f32.mxu1 %vm4078_vm2, %v4079_v14  ;;  %v3721_v15 = vpack.c.bf16 %v930_v13, %v929_v10  ;;  %v4377_v20 = vshrl.u32 %v896_v18, 7  ;;  %v4381_v22 = vld [vmem:[%s4291_s16] sm:$0x3f]  ;;  %s4082_s16 = smov 88   ;;  %s4083_s20 = smov 80   ;;  %vm1015_vm3 = vcmask 64512  }
  0x53   : > { %3530 = vmatprep.subr.mxu0 %v4079_v14  ;;  %3532 = vmatprep.mubr.msk.f32.mxu0 %vm4078_vm2, %v4079_v14  ;;  %v3360_v30 = vld [vmem:[%s4839_s9] ss:$0 sm:$0xff]  ;;  %s4084_s1 = smov 72   ;;  %s4085_s2 = smov 112   ;;  %v899_v42 = vand.u32 127, %v896_v18  ;;  %vm1686_vm5 = vcmask 130048   ;;  %vm4517_vm7 = vmpackc.low %vm1015_vm3, %vm1015_vm3 }
  0x54   : > { %3719 = vmatpush3.bf16.msra.mxu1 %v3718_v12  ;;  %v919_v21 = vsub.s32 0, %v4377_v20  ;;  %v924_v23 = vsub.s32 1, %v4377_v20  ;;  %s4086_s18 = smov 104   ;;  %s4087_s14 = smov 64   ;;  %vm1688_vm6 = vcmask 195584  }
  0x55   : > { %3720 = vmatprep.subr.bf16.mxu1 %v4077_v11  ;;  %vm900_vm4 = vcmp.gt.s32.totalorder %v899_v42, %v4377_v20  ;;  %s4088_s28 = smov 48   ;;  %s4089_s3 = smov 40  }
  0x56   : > { %v920_v24 = vrot.slane %v4381_v22, %v919_v21  ;;  %v925_v27 = vrot.slane %v4381_v22, %v924_v23  ;;  %v901_v43 = vsel %vm900_vm4, -1e+09, %v4079_v14  ;;  %s4090_s23 = smov 56   ;;  %s4091_s26 = smov 8  }
  0x57   : > { %s4092_s25 = smov 16   ;;  %s4093_s17 = smov 24  }
  0x58   : > { %3722 = vmatpush3.bf16.msra.mxu1 %v3721_v15  ;;  %s4841_s9 = sld [smem:[#allocation19_spill]] }
  0x59   : > { %3520 = vmatprep.subr.mxu1 %v4079_v14 }
  0xdf   : > { %v905_v3 = vpop.xlane.xlu0 %904 }
  0xe0   : > { %v907_v4 = vmul.f32 0.03125, %v905_v3 }
  0xe2   : > { %v908_v5 = vsub.f32 %v4359_v1, %v907_v4 }
  0xe4   : > { %v909_v6 = vmul.f32 %v908_v5, %v908_v5 }
  0xe6   : > { %v910_v7 = vsel %vm902_vm1, %v909_v6, 0.0 }
  0xe7   : > { %911 = vadd.xlane.f32.xlu0 %v910_v7 }
 0x174   : > { %v912_v16 = vpop.xlane.xlu0 %911 }
 0x175   : > { %v913_v17 = vmul.f32 0.03125, %v912_v16 }
 0x177   : > { %v914_v19 = vadd.f32 1e-05, %v913_v17 }
 0x179   : > { %3939 = vrsqrt.f32 %v914_v19 }
 0x183   : > { %v3940_v25 = vpop.eup %3939 }
 0x184   : > { %v916_v26 = vmul.f32 %v3940_v25, %v908_v5 }
 0x186   : > { %v921_v28 = vmul.f32 %v920_v24, %v916_v26 }
 0x188   : > { %v926_v29 = vadd.f32 %v925_v27, %v921_v28 }
 0x18a   : > { %3518 = vmatmul.mubr.msk.f32.vlgmr.msra.gmra.mrb[0].mxu1 %vm902_vm1, %v926_v29 }
 0x18b   : > { %3522 = vmatprep.mubr.msk.f32.mxu1 %vm4078_vm2, %v4079_v14 }
 0x25d   : > { %v1007_v31 = vpop.f32.mrb[0].mxu1 }
 0x25e   : > { %v4398_v32 = vadd.f32 %v3360_v30, %v1007_v31  ;;  %v3519_v33 = vpop.f32.mrb[1].mxu1 }
 0x260   : > { %1013 = vrot.lane.b32.xlu1 %v4398_v32, %s4080_s10  ;;  %v1011_v34 = vmul.f32 0.35355338, %v4398_v32 }
 0x262   : > { %1178 = vrot.lane.b32.xlu0 %v1011_v34, %s4081_s11 }
 0x264   : > { %1180 = vrot.lane.b32.xlu1 %v4398_v32, %s4082_s16 }
 0x268   : > { %1345 = vrot.lane.b32.xlu1 %v4398_v32, %s4083_s20 }
 0x26c   : > { %1510 = vrot.lane.b32.xlu1 %v4398_v32, %s4084_s1 }
 0x270   : > { %1343 = vrot.lane.b32.xlu1 %v1011_v34, %s4085_s2 }
 0x274   : > { %1508 = vrot.lane.b32.xlu1 %v1011_v34, %s4086_s18 }
 0x2d2   : > { %v1014_v35 = vpop.permute.xlu1 %1013 }
 0x2d3   : > { %3521 = vmatpush3.xpose.msk.msra.mxu1 %vm1015_vm3, %v1014_v35 }
 0x2d4   : > { %3525 = vmatprep.subr.mxu1 %v4079_v14  ;;  %v1179_v37 = vpop.permute.xlu0 %1178 }
 0x2d6   : > { %v1181_v36 = vpop.permute.xlu1 %1180  ;;  %3523 = vmatmul.mubr.msk.f32.vlgmr.msra.gmra.mrb[2].mxu1 %vm1015_vm3, %v1011_v34 }
 0x2d7   : > { %3531 = vmatpush3.xpose.msk.msra.mxu0 %vm1015_vm3, %v1181_v36  ;;  %3527 = vmatprep.mubr.msk.f32.mxu1 %vm4078_vm2, %v4079_v14 }
 0x2d8   : > { %3540 = vmatprep.subr.mxu0 %v4079_v14 }
 0x2da   : > { %v1346_v38 = vpop.permute.xlu1 %1345  ;;  %3533 = vmatmul.mubr.msk.f32.vlgmr.msra.gmra.mrb[0].mxu0 %vm1015_vm3, %v1179_v37 }
 0x2db   : > { %3541 = vmatpush3.xpose.msk.msra.mxu0 %vm1015_vm3, %v1346_v38  ;;  %3542 = vmatprep.mubr.msk.f32.mxu0 %vm4078_vm2, %v4079_v14 }
 0x2dc   : > { %3550 = vmatprep.subr.mxu0 %v4079_v14 }
 0x2de   : > { %v1511_v39 = vpop.permute.xlu1 %1510 }
 0x2e2   : > { %v1344_v40 = vpop.permute.xlu1 %1343 }
 0x2e3   : > { %3543 = vmatmul.mubr.msk.f32.vlgmr.msra.gmra.mrb[2].mxu0 %vm1015_vm3, %v1344_v40  ;;  %v1691_v40 = vld [vmem:[%s4305_s29 + $0x8] sm:$0xff] }
 0x2e4   : > { %3551 = vmatpush3.xpose.msk.msra.mxu0 %vm1015_vm3, %v1511_v39  ;;  %3552 = vmatprep.mubr.msk.f32.mxu0 %vm4078_vm2, %v4079_v14  ;;  %v1690_v39 = vld [vmem:[%s4305_s29] sm:$0xff] }
 0x2e6   : > { %v1509_v41 = vpop.permute.xlu1 %1508 }
 0x2e7   : > { %3553 = vmatmul.mubr.msk.f32.vlgmr.msra.gmra.mrb[4].mxu0 %vm1015_vm3, %v1509_v41  ;;  %v3724_v41 = vpack.c.bf16 %v1691_v40, %v1690_v39 }
 0x3a9   : > { %v1087_v44 = vpop.f32.mrb[2].mxu1 }
 0x3aa   : > { %v1088_v45 = vadd.f32 %v1087_v44, %v901_v43  ;;  %v3524_v46 = vpop.f32.mrb[3].mxu1  ;;  %v1692_v44 = vld [vmem:[%s4305_s29 + $0x10] sm:$0xff] }
 0x3ac   : > { %v1091_v47 = vsel %vm1015_vm3, %v1088_v45, -inf }
 0x3ad   : > { %v1252_v48 = vpop.f32.mrb[0].mxu0  ;;  %1092 = vmax.xlane.f32.xlu1 %v1091_v47 }
 0x3ae   : > { %v1253_v49 = vadd.f32 %v1252_v48, %v901_v43  ;;  %v3534_v50 = vpop.f32.mrb[1].mxu0 }
 0x3b0   : > { %v1256_v51 = vsel %vm1015_vm3, %v1253_v49, -inf }
 0x3b1   : > { %1257 = vmax.xlane.f32.xlu0 %v1256_v51 }
 0x3b6   : > { %v1417_v52 = vpop.f32.mrb[2].mxu0 }
 0x3b7   : > { %v1418_v53 = vadd.f32 %v1417_v52, %v901_v43  ;;  %v3544_v54 = vpop.f32.mrb[3].mxu0 }
 0x3b9   : > { %v1421_v55 = vsel %vm1015_vm3, %v1418_v53, -inf }
 0x3ba   : > { %v1582_v56 = vpop.f32.mrb[4].mxu0  ;;  %1422 = vmax.xlane.f32.xlu1 %v1421_v55 }
 0x3bb   : > { %v1583_v57 = vadd.f32 %v1582_v56, %v901_v43  ;;  %v3554_v58 = vpop.f32.mrb[5].mxu0 }
 0x3bd   : > { %v1586_v59 = vsel %vm1015_vm3, %v1583_v57, -inf }
 0x3be   : > { %1587 = vmax.xlane.f32.xlu0 %v1586_v59 }
 0x3cb   : > { %1102 = vrot.lane.b32.xlu1 %v4398_v32, %s4087_s14  ;;  %s4842_s14 = sld [smem:[#allocation29_spill]] }
 0x43a   : > { %v1093_v60 = vpop.xlane.xlu1 %1092 }
 0x43b   : > { %v1094_v61 = vsub.f32 %v1088_v45, %v1093_v60  ;;  %v1693_v45 = vld [vmem:[%s4305_s29 + $0x18] sm:$0xff]  ;;  %v3375_v60 = vld [vmem:[%s4840_s7] ss:$0 sm:$0xff]  ;;  %s4846_s29 = sld [smem:[#allocation27_spill]] }
 0x43c   : > { %v3727_v46 = vpack.c.bf16 %v1693_v45, %v1692_v44 }
 0x43d   : > { %v1095_v62 = vmul.f32 1.442695, %v1094_v61 }
 0x43e   : > { %v1258_v63 = vpop.xlane.xlu0 %1257 }
 0x43f   : > { %3941 = vpow2.f32 %v1095_v62  ;;  %v1259_v0 = vsub.f32 %v1253_v49, %v1258_v63 }
 0x441   : > { %v1260_v2 = vmul.f32 1.442695, %v1259_v0  ;;  %s4847_s5 = scalar_lea.vmem %s4846_s29, %s4276_s0 }
 0x443   : > { %3943 = vpow2.f32 %v1260_v2 }
 0x447   : > { %v1423_v3 = vpop.xlane.xlu1 %1422 }
 0x448   : > { %v1424_v4 = vsub.f32 %v1418_v53, %v1423_v3 }
 0x449   : > { %v3942_v5 = vpop.eup %3941 }
 0x44a   : > { %v1425_v6 = vmul.f32 1.442695, %v1424_v4  ;;  %v1097_v7 = vsel %vm1015_vm3, %v3942_v5, 0.0 }
 0x44b   : > { %v1588_v8 = vpop.xlane.xlu0 %1587  ;;  %1098 = vadd.xlane.f32.xlu1 %v1097_v7  ;;  %v1103_v9 = vpop.permute.xlu1 %1102  ;;  %v1885_v7 = vld [vmem:[%s4323_s19 + $0x8] sm:$0xff] }
 0x44c   : > { %3945 = vpow2.f32 %v1425_v6  ;;  %v1589_v10 = vsub.f32 %v1583_v57, %v1588_v8  ;;  %3526 = vmatpush3.msra.mxu1 %v1103_v9  ;;  %v1886_v9 = vld [vmem:[%s4323_s19 + $0x10] sm:$0xff] }
 0x44d   : > { %v3944_v12 = vpop.eup %3943  ;;  %3535 = vmatprep.subr.mxu1 %v4079_v14 }
 0x44e   : > { %v1590_v13 = vmul.f32 1.442695, %v1589_v10  ;;  %v1262_v15 = vsel %vm1015_vm3, %v3944_v12, 0.0  ;;  %v1887_v10 = vld [vmem:[%s4323_s19 + $0x18] sm:$0xff] }
 0x44f   : > { %1263 = vadd.xlane.f32.xlu0 %v1262_v15  ;;  %v894_v15 = vld [vmem:[%s4841_s9 + $0x8] sm:$0xff] }
 0x450   : > { %3947 = vpow2.f32 %v1590_v13  ;;  %v893_v13 = vld [vmem:[%s4841_s9] sm:$0xff] }
 0x451   : > { %3590 = vmatprep.mubr.msk.f32.mxu0 %vm902_vm1, %v893_v13 }
 0x456   : > { %v3946_v16 = vpop.eup %3945 }
 0x457   : > { %v1427_v17 = vsel %vm1015_vm3, %v3946_v16, 0.0 }
 0x458   : > { %1428 = vadd.xlane.f32.xlu1 %v1427_v17  ;;  %v1800_v17 = vld [vmem:[%s4314_s15 + $0x8] sm:$0xff] }
 0x45a   : > { %v3948_v18 = vpop.eup %3947 }
 0x45b   : > { %v1592_v19 = vsel %vm1015_vm3, %v3948_v18, 0.0 }
 0x45c   : > { %1593 = vadd.xlane.f32.xlu0 %v1592_v19  ;;  %v1801_v19 = vld [vmem:[%s4314_s15 + $0x10] sm:$0xff] }
 0x469   : > { %1432 = vrot.lane.b32.xlu1 %v4398_v32, %s4088_s28  ;;  %s4843_s28 = scalar_lea.vmem %s4842_s14, %s4276_s0 }
 0x46d   : > { %1597 = vrot.lane.b32.xlu1 %v4398_v32, %s4089_s3 }
 0x472   : > { %1267 = vrot.lane.b32.xlu0 %v4398_v32, %s4090_s23 }
 0x4d8   : > { %v1099_v24 = vpop.xlane.xlu1 %1098 }
 0x4d9   : > { %3949 = vrcp.f32 %v1099_v24  ;;  %v1802_v24 = vld [vmem:[%s4314_s15 + $0x18] sm:$0xff] }
 0x4dc   : > { %v1264_v25 = vpop.xlane.xlu0 %1263 }
 0x4dd   : > { %3951 = vrcp.f32 %v1264_v25  ;;  %v3733_v25 = vpack.c.bf16 %v1802_v24, %v1801_v19 }
 0x4e3   : > { %v3950_v26 = vpop.eup %3949 }
 0x4e4   : > { %v1101_v27 = vmul.f32 %v3950_v26, %v3942_v5 }
 0x4e5   : > { %v1429_v28 = vpop.xlane.xlu1 %1428 }
 0x4e6   : > { %3953 = vrcp.f32 %v1429_v28  ;;  %3528 = vmatmul.mubr.msk.f32.vlgmr.msra.gmra.mrb[4].mxu1 %vm1015_vm3, %v1101_v27 }
 0x4e7   : > { %3537 = vmatprep.mubr.msk.f32.mxu1 %vm4078_vm2, %v4079_v14  ;;  %v3952_v30 = vpop.eup %3951 }
 0x4e8   : > { %v1266_v31 = vmul.f32 %v3952_v30, %v3944_v12  ;;  %v3739_v12 = vpack.c.bf16 %v1887_v10, %v1886_v9  ;;  %v1796_v30 = vsub.s32 3, %v4377_v20 }
 0x4e9   : > { %v1594_v29 = vpop.xlane.xlu0 %1593  ;;  %v1433_v33 = vpop.permute.xlu1 %1432 }
 0x4ea   : > { %3955 = vrcp.f32 %v1594_v29  ;;  %v1791_v29 = vsub.s32 2, %v4377_v20 }
 0x4ed   : > { %v1268_v34 = vpop.permute.xlu0 %1267  ;;  %v1598_v36 = vpop.permute.xlu1 %1597 }
 0x4ee   : > { %3536 = vmatpush3.msra.mxu1 %v1268_v34 }
 0x4ef   : > { %3538 = vmatmul.mubr.msk.f32.vlgmr.msra.gmra.mrb[6].mxu1 %vm1015_vm3, %v1266_v31  ;;  %3545 = vmatprep.subr.mxu1 %v4079_v14  ;;  %v1792_v31 = vrot.slane %v4381_v22, %v1791_v29 }
 0x4f0   : > { %v3954_v32 = vpop.eup %3953  ;;  %3546 = vmatpush3.msra.mxu1 %v1433_v33  ;;  %3547 = vmatprep.mubr.msk.f32.mxu1 %vm4078_vm2, %v4079_v14 }
 0x4f1   : > { %v1431_v35 = vmul.f32 %v3954_v32, %v3946_v16  ;;  %3555 = vmatprep.subr.mxu1 %v4079_v14  ;;  %v1799_v16 = vld [vmem:[%s4314_s15] sm:$0xff]  ;;  %v1797_v32 = vrot.slane %v4381_v22, %v1796_v30 }
 0x4f3   : > { %3548 = vmatmul.mubr.msk.f32.vlgmr.msra.gmra.mrb[8].mxu1 %vm1015_vm3, %v1431_v35 }
 0x4f4   : > { %v3956_v37 = vpop.eup %3955  ;;  %3556 = vmatpush3.msra.mxu1 %v1598_v36  ;;  %3557 = vmatprep.mubr.msk.f32.mxu1 %vm4078_vm2, %v4079_v14 }
 0x4f5   : > { %v1596_v38 = vmul.f32 %v3956_v37, %v3948_v18  ;;  %3723 = vmatprep.subr.bf16.mxu1 %v4077_v11  ;;  %v3730_v18 = vpack.c.bf16 %v1800_v17, %v1799_v16  ;;  %v3378_v37 = vld [vmem:[%s4843_s28] ss:$0 sm:$0xff] }
 0x4f7   : > { %3558 = vmatmul.mubr.msk.f32.vlgmr.msra.gmra.mrb[10].mxu1 %vm1015_vm3, %v1596_v38 }
 0x4f8   : > { %3568 = vmatprep.mubr.msk.f32.mxu1 %vm4078_vm2, %v4079_v14  ;;  %3725 = vmatpush3.bf16.msra.mxu1 %v3724_v41 }
 0x4f9   : > { %3726 = vmatprep.subr.bf16.mxu1 %v4077_v11 }
 0x4fc   : > { %3728 = vmatpush3.bf16.msra.mxu1 %v3727_v46  ;;  %v3376_v46 = vld [vmem:[%s4847_s5] ss:$0 sm:$0xff] }
 0x4fd   : > { %3729 = vmatprep.subr.bf16.mxu1 %v4077_v11 }
 0x5b9   : > { %v1174_v42 = vpop.f32.mrb[4].mxu1 }
 0x5ba   : > { %v3529_v43 = vpop.f32.mrb[5].mxu1 }
 0x5c2   : > { %v1339_v47 = vpop.f32.mrb[6].mxu1 }
 0x5c3   : > { %1674 = vrot.lane.b32.xlu0 %v1339_v47, %s4091_s26  ;;  %v3539_v48 = vpop.f32.mrb[7].mxu1 }
 0x5c6   : > { %v1504_v49 = vpop.f32.mrb[8].mxu1 }
 0x5c7   : > { %1678 = vrot.lane.b32.xlu1 %v1504_v49, %s4092_s25  ;;  %v3549_v50 = vpop.f32.mrb[9].mxu1 }
 0x5ca   : > { %v1669_v51 = vpop.f32.mrb[10].mxu1 }
 0x5cb   : > { %1682 = vrot.lane.b32.xlu0 %v1669_v51, %s4093_s17  ;;  %v3559_v52 = vpop.f32.mrb[11].mxu1 }
 0x635   : > { %v1675_v53 = vpop.permute.xlu0 %1674 }
 0x636   : > { %v1685_v55 = vsel %vm1015_vm3, %v1174_v42, %v1675_v53 }
 0x639   : > { %v1679_v54 = vpop.permute.xlu1 %1678 }
 0x63a   : > { %v1687_v56 = vsel %vm1686_vm5, %v1685_v55, %v1679_v54 }
 0x63d   : > { %v1683_v57 = vpop.permute.xlu0 %1682 }
 0x63e   : > { %v1689_v58 = vsel %vm1688_vm6, %v1687_v56, %v1683_v57 }
 0x63f   : > { %3569 = vmatmul.mubr.msk.f32.vlgmr.msra.gmra.mrb[12].mxu1 %vm902_vm1, %v1689_v58 }
 0x640   : > { %3579 = vmatprep.mubr.msk.f32.mxu1 %vm4078_vm2, %v4079_v14  ;;  %3731 = vmatpush3.bf16.msra.mxu1 %v3730_v18 }
 0x641   : > { %3732 = vmatprep.subr.bf16.mxu1 %v4077_v11 }
 0x644   : > { %3734 = vmatpush3.bf16.msra.mxu1 %v3733_v25 }
 0x645   : > { %3743 = vmatprep.subr.bf16.mxu1 %v4077_v11 }
 0x712   : > { %v1763_v59 = vpop.f32.mrb[12].mxu1 }
 0x713   : > { %v1767_v61 = vadd.f32 %v1763_v59, %v4359_v1  ;;  %v3570_v62 = vpop.f32.mrb[13].mxu1  ;;  %v1884_v1 = vld [vmem:[%s4323_s19] sm:$0xff] }
 0x714   : > { %v3735_v8 = vpack.c.bf16 %v1885_v7, %v1884_v1 }
 0x715   : > { %v4480_v63 = vadd.f32 %v3375_v60, %v1767_v61 }
 0x716   : > { %3736 = vmatprep.subr.bf16.mxu0 %v3735_v8 }
 0x717   : > { %v1776_v0 = vsel %vm902_vm1, %v4480_v63, 0.0  ;;  %3738 = vmatpush3.bf16.msra.mxu0 %v3735_v8 }
 0x718   : > { %1777 = vadd.xlane.f32.xlu1 %v1776_v0  ;;  %3740 = vmatprep.subr.bf16.mxu0 %v3739_v12 }
 0x71b   : > { %3742 = vmatpush3.bf16.msra.mxu0 %v3739_v12 }
 0x71c   : > { %3747 = vmatprep.subr.bf16.mxu0 %v4077_v11 }
 0x71e   : > { %3591 = vmatmul.mubr.msk.f32.vlgmr.msra.gmra.mrb[6].mxu0 %vm902_vm1, %v894_v15 }
 0x71f   : > { %3604 = vmatprep.mubr.msk.f32.mxu0 %vm4078_vm2, %v4079_v14 }
 0x7a5   : > { %v1778_v2 = vpop.xlane.xlu1 %1777 }
 0x7a6   : > { %v1779_v3 = vmul.f32 0.03125, %v1778_v2 }
 0x7a8   : > { %v1780_v4 = vsub.f32 %v4480_v63, %v1779_v3 }
 0x7aa   : > { %v1781_v5 = vmul.f32 %v1780_v4, %v1780_v4 }
 0x7ac   : > { %v1782_v6 = vsel %vm902_vm1, %v1781_v5, 0.0 }
 0x7ad   : > { %1783 = vadd.xlane.f32.xlu0 %v1782_v6 }
 0x7f1   : > { %v3592_v38 = vpop.f32.mrb[6].mxu0 }
 0x7f2   : > { %v1973_v39 = vadd.f32 %v3592_v38, %v3378_v37  ;;  %v1967_v40 = vpop.f32.mrb[7].mxu0 }
 0x7f3   : > { %v1968_v41 = vadd.f32 %v3378_v37, %v1967_v40 }
 0x7f5   : > { %v4521_v43 = vpack.i.bf16 %v1973_v39, %v1968_v41  ;;  %v3744_v44 = vpack.c.bf16 %v1973_v39, %v1968_v41 }
 0x7f7   : > { %3905 = vrot.lane.b32.xlu0 %v4521_v43, %s4081_s11 }
 0x83a   : > { %v1784_v26 = vpop.xlane.xlu0 %1783 }
 0x83b   : > { %v1785_v27 = vmul.f32 0.03125, %v1784_v26 }
 0x83d   : > { %v1786_v28 = vadd.f32 1e-05, %v1785_v27 }
 0x83f   : > { %3957 = vrsqrt.f32 %v1786_v28 }
 0x849   : > { %v3958_v33 = vpop.eup %3957 }
 0x84a   : > { %v1788_v34 = vmul.f32 %v3958_v33, %v1780_v4 }
 0x84c   : > { %v1793_v35 = vmul.f32 %v1792_v31, %v1788_v34 }
 0x84e   : > { %v1798_v36 = vadd.f32 %v1797_v32, %v1793_v35 }
 0x850   : > { %3580 = vmatmul.mubr.msk.f32.vlgmr.msra.gmra.mrb[14].mxu1 %vm902_vm1, %v1798_v36 }
 0x851   : > { %3597 = vmatprep.mubr.msk.f32.mxu1 %vm4078_vm2, %v4079_v14  ;;  %3746 = vmatpush3.bf16.xpose.msk.msra.mxu1 %vm4517_vm7, %v3744_v44 }
 0x852   : > { %3750 = vmatprep.subr.bf16.mxu1 %v4077_v11 }
 0x869   : > { %v3906_v45 = vpop.permute.xlu0 %3905 }
 0x86a   : > { %v3908_v47 = vunpack.i.h.bf16 %v3906_v45  ;;  %v3907_v48 = vunpack.i.l.bf16 %v3906_v45 }
 0x86c   : > { %v3751_v52 = vpack.c.bf16 %v3908_v47, %v3907_v48 }
 0x923   : > { %v1879_v49 = vpop.f32.mrb[14].mxu1 }
 0x924   : > { %v1880_v50 = vadd.f32 %v3376_v46, %v1879_v49  ;;  %v3581_v51 = vpop.f32.mrb[15].mxu1 }
 0x926   : > { %v4533_v53 = vmul.f32 0.35355338, %v1880_v50 }
 0x928   : > { %2145 = vrot.lane.b32.xlu1 %v4533_v53, %s4081_s11  ;;  %3598 = vmatmul.mubr.msk.f32.vlgmr.msra.gmra.mrb[16].mxu1 %vm1015_vm3, %v4533_v53 }
 0x929   : > { %3753 = vmatpush3.bf16.xpose.msk.msra.mxu1 %vm4517_vm7, %v3751_v52  ;;  %3611 = vmatprep.mubr.msk.f32.mxu1 %vm4078_vm2, %v4079_v14 }
 0x92a   : > { %3761 = vmatprep.subr.bf16.mxu1 %v4077_v11 }
 0x99a   : > { %v2146_v54 = vpop.permute.xlu1 %2145 }
 0x99b   : > { %3612 = vmatmul.mubr.msk.f32.vlgmr.msra.gmra.mrb[18].mxu1 %vm1015_vm3, %v2146_v54 }
 0x99c   : > { %3632 = vmatprep.mubr.msk.f32.mxu1 %vm4078_vm2, %v4079_v14 }
 0x9fb   : > { %v2051_v55 = vpop.f32.mrb[16].mxu1 }
 0x9fc   : > { %v3599_v56 = vpop.f32.mrb[17].mxu1  ;;  %v2055_v57 = vsel %vm1686_vm5, %v2051_v55, -inf }
 0x9fd   : > { %2056 = vmax.xlane.f32.xlu1 %v2055_v57 }
 0xa0e   : > { %3915 = vrot.lane.b32.xlu1 %v4521_v43, %s4082_s16 }
 0xa6e   : > { %v2223_v58 = vpop.f32.mrb[18].mxu1 }
 0xa6f   : > { %v3613_v59 = vpop.f32.mrb[19].mxu1  ;;  %v2227_v60 = vsel %vm1686_vm5, %v2223_v58, -inf }
 0xa70   : > { %2228 = vmax.xlane.f32.xlu0 %v2227_v60 }
 0xa8a   : > { %v2057_v61 = vpop.xlane.xlu1 %2056 }
 0xa8b   : > { %v2058_v62 = vsub.f32 %v2051_v55, %v2057_v61 }
 0xa8d   : > { %v2059_v0 = vmul.f32 1.442695, %v2058_v62 }
 0xa8e   : > { %v3916_v13 = vpop.permute.xlu1 %3915 }
 0xa8f   : > { %3959 = vpow2.f32 %v2059_v0  ;;  %v3918_v16 = vunpack.i.h.bf16 %v3916_v13  ;;  %v3917_v17 = vunpack.i.l.bf16 %v3916_v13 }
 0xa91   : > { %v3755_v24 = vpack.c.bf16 %v3918_v16, %v3917_v17 }
 0xa99   : > { %v3960_v2 = vpop.eup %3959 }
 0xa9a   : > { %v2061_v3 = vsel %vm1686_vm5, %v3960_v2, 0.0 }
 0xa9b   : > { %2062 = vadd.xlane.f32.xlu0 %v2061_v3 }
 0xab1   : > { %3910 = vrot.lane.b32.xlu0 %v4521_v43, %s4080_s10  ;;  %s4848_s10 = sld [smem:[#allocation20_spill]] }
 0xab5   : > { %2317 = vrot.lane.b32.xlu0 %v4533_v53, %s4085_s2 }
 0xab7   : > { %v2677_v13 = vld [vmem:[%s4848_s10 + $0x8] sm:$0xff]  ;;  %v2679_v17 = vld [vmem:[%s4848_s10 + $0x18] sm:$0xff] }
 0xafd   : > { %v2229_v4 = vpop.xlane.xlu0 %2228 }
 0xafe   : > { %v2230_v5 = vsub.f32 %v2223_v58, %v2229_v4 }
 0xb00   : > { %v2231_v6 = vmul.f32 1.442695, %v2230_v5 }
 0xb02   : > { %3961 = vpow2.f32 %v2231_v6 }
 0xb0c   : > { %v3962_v1 = vpop.eup %3961 }
 0xb0d   : > { %v2233_v7 = vsel %vm1686_vm5, %v3962_v1, 0.0 }
 0xb0e   : > { %2234 = vadd.xlane.f32.xlu1 %v2233_v7 }
 0xb1f   : > { %3920 = vrot.lane.b32.xlu1 %v4521_v43, %s4085_s2 }
 0xb28   : > { %v2063_v8 = vpop.xlane.xlu0 %2062 }
 0xb29   : > { %3963 = vrcp.f32 %v2063_v8 }
 0xb2c   : > { %v3911_v9 = vpop.permute.xlu0 %3910 }
 0xb2d   : > { %v3913_v10 = vunpack.i.h.bf16 %v3911_v9  ;;  %v3912_v12 = vunpack.i.l.bf16 %v3911_v9 }
 0xb2f   : > { %v3748_v15 = vpack.c.bf16 %v3913_v10, %v3912_v12  ;;  %v2676_v12 = vld [vmem:[%s4848_s10] sm:$0xff] }
 0xb30   : > { %v2318_v33 = vpop.permute.xlu0 %2317  ;;  %v3772_v16 = vpack.c.bf16 %v2677_v13, %v2676_v12  ;;  %v2890_v12 = vld [vmem:[%s4351_s24 + $0x60] sm:$0xff]  ;;  %v2891_v13 = vld [vmem:[%s4351_s24 + $0x68] sm:$0xff] }
 0xb31   : > { %3749 = vmatpush3.bf16.msra.mxu0 %v3748_v15  ;;  %v2678_v15 = vld [vmem:[%s4848_s10 + $0x10] sm:$0xff] }
 0xb32   : > { %3754 = vmatprep.subr.bf16.mxu0 %v4077_v11 }
 0xb33   : > { %v3964_v18 = vpop.eup %3963 }
 0xb34   : > { %v2065_v19 = vmul.f32 %v3964_v18, %v3960_v2  ;;  %v3775_v18 = vpack.c.bf16 %v2679_v17, %v2678_v15  ;;  %v3802_v15 = vpack.c.bf16 %v2891_v13, %v2890_v12  ;;  %v2893_v17 = vld [vmem:[%s4351_s24 + $0x78] sm:$0xff] }
 0xb36   : > { %3605 = vmatmul.mubr.msk.f32.vlgmr.msra.gmra.mrb[8].mxu0 %vm1686_vm5, %v2065_v19 }
 0xb37   : > { %3756 = vmatpush3.bf16.msra.mxu0 %v3755_v24  ;;  %3618 = vmatprep.mubr.msk.f32.mxu0 %vm4078_vm2, %v4079_v14 }
 0xb38   : > { %3757 = vmatprep.subr.bf16.mxu0 %v4077_v11 }
 0xb9b   : > { %v2235_v25 = vpop.xlane.xlu1 %2234 }
 0xb9c   : > { %3965 = vrcp.f32 %v2235_v25 }
 0xb9f   : > { %v3921_v26 = vpop.permute.xlu1 %3920 }
 0xba0   : > { %v3923_v27 = vunpack.i.h.bf16 %v3921_v26  ;;  %v3922_v28 = vunpack.i.l.bf16 %v3921_v26 }
 0xba2   : > { %v3758_v31 = vpack.c.bf16 %v3923_v27, %v3922_v28 }
 0xba6   : > { %v3966_v29 = vpop.eup %3965 }
 0xba7   : > { %v2237_v30 = vmul.f32 %v3966_v29, %v3962_v1 }
 0xba9   : > { %3619 = vmatmul.mubr.msk.f32.vlgmr.msra.gmra.mrb[10].mxu0 %vm1686_vm5, %v2237_v30 }
 0xbaa   : > { %3760 = vmatpush3.bf16.xpose.msk.msra.mxu0 %vm4517_vm7, %v3758_v31  ;;  %3625 = vmatprep.mubr.msk.f32.mxu0 %vm4078_vm2, %v4079_v14 }
 0xbab   : > { %3768 = vmatprep.subr.bf16.mxu0 %v4077_v11 }
 0xbb1   : > { %3626 = vmatmul.mubr.msk.f32.vlgmr.msra.gmra.mrb[12].mxu0 %vm1015_vm3, %v2318_v33 }
 0xbb2   : > { %3646 = vmatprep.mubr.msk.f32.mxu0 %vm4078_vm2, %v4079_v14 }
 0xc09   : > { %v4573_v34 = vpop.f32.mrb[8].mxu0 }
 0xc0a   : > { %v3606_v32 = vpop.f32.mrb[9].mxu0 }
 0xc7c   : > { %v2313_v35 = vpop.f32.mrb[10].mxu0 }
 0xc7d   : > { %v3620_v36 = vpop.f32.mrb[11].mxu0 }
 0xc84   : > { %v2395_v37 = vpop.f32.mrb[12].mxu0 }
 0xc85   : > { %v3627_v38 = vpop.f32.mrb[13].mxu0  ;;  %v2399_v39 = vsel %vm1686_vm5, %v2395_v37, -inf }
 0xc86   : > { %2400 = vmax.xlane.f32.xlu1 %v2399_v39 }
 0xc97   : > { %3930 = vrot.lane.b32.xlu1 %v4521_v43, %s4086_s18 }
 0xc9b   : > { %2489 = vrot.lane.b32.xlu1 %v4533_v53, %s4086_s18 }
 0xd13   : > { %v2401_v40 = vpop.xlane.xlu1 %2400 }
 0xd14   : > { %v2402_v41 = vsub.f32 %v2395_v37, %v2401_v40 }
 0xd16   : > { %v2403_v44 = vmul.f32 1.442695, %v2402_v41  ;;  %v2786_v41 = vld [vmem:[%s4341_s27 + $0x8] sm:$0xff] }
 0xd17   : > { %v3931_v52 = vpop.permute.xlu1 %3930 }
 0xd18   : > { %3967 = vpow2.f32 %v2403_v44  ;;  %v3933_v54 = vunpack.i.h.bf16 %v3931_v52  ;;  %v3932_v55 = vunpack.i.l.bf16 %v3931_v52 }
 0xd1a   : > { %v3765_v57 = vpack.c.bf16 %v3933_v54, %v3932_v55  ;;  %v2777_v54 = vsub.s32 4, %v4377_v20  ;;  %v2782_v55 = vsub.s32 5, %v4377_v20 }
 0xd1b   : > { %v2490_v58 = vpop.permute.xlu1 %2489 }
 0xd22   : > { %v3968_v45 = vpop.eup %3967 }
 0xd23   : > { %v2405_v46 = vsel %vm1686_vm5, %v3968_v45, 0.0 }
 0xd24   : > { %2406 = vadd.xlane.f32.xlu0 %v2405_v46  ;;  %v2788_v46 = vld [vmem:[%s4341_s27 + $0x18] sm:$0xff] }
 0xd3a   : > { %3925 = vrot.lane.b32.xlu0 %v4521_v43, %s4083_s20  ;;  %s4849_s20 = scalar_lea.vmem %s4766_s12, %s4276_s0 }
 0xd3b   : > { %v3398_v33 = vld [vmem:[%s4849_s20] ss:$0 sm:$0xff] }
 0xdb1   : > { %v2407_v47 = vpop.xlane.xlu0 %2406 }
 0xdb2   : > { %3969 = vrcp.f32 %v2407_v47 }
 0xdb5   : > { %v3926_v48 = vpop.permute.xlu0 %3925 }
 0xdb6   : > { %v3928_v49 = vunpack.i.h.bf16 %v3926_v48  ;;  %v3927_v50 = vunpack.i.l.bf16 %v3926_v48  ;;  %v2878_v48 = vld [vmem:[%s4351_s24] sm:$0xff] }
 0xdb8   : > { %v3762_v51 = vpack.c.bf16 %v3928_v49, %v3927_v50  ;;  %v2879_v49 = vld [vmem:[%s4351_s24 + $0x8] sm:$0xff] }
 0xdb9   : > { %v3784_v50 = vpack.c.bf16 %v2879_v49, %v2878_v48 }
 0xdba   : > { %3763 = vmatpush3.bf16.msra.mxu1 %v3762_v51 }
 0xdbb   : > { %3764 = vmatprep.subr.bf16.mxu1 %v4077_v11 }
 0xdbc   : > { %v3970_v53 = vpop.eup %3969 }
 0xdbd   : > { %v2409_v56 = vmul.f32 %v3970_v53, %v3968_v45  ;;  %v2787_v45 = vld [vmem:[%s4341_s27 + $0x10] sm:$0xff] }
 0xdbe   : > { %v3781_v47 = vpack.c.bf16 %v2788_v46, %v2787_v45 }
 0xdbf   : > { %3633 = vmatmul.mubr.msk.f32.vlgmr.msra.gmra.mrb[20].mxu1 %vm1686_vm5, %v2409_v56  ;;  %v2778_v56 = vrot.slane %v4381_v22, %v2777_v54 }
 0xdc0   : > { %3639 = vmatprep.mubr.msk.f32.mxu1 %vm4078_vm2, %v4079_v14 }
 0xdc3   : > { %3767 = vmatpush3.bf16.xpose.msk.msra.mxu1 %vm4517_vm7, %v3765_v57 }
 0xdc4   : > { %3777 = vmatprep.subr.bf16.mxu1 %v4077_v11 }
 0xdca   : > { %3640 = vmatmul.mubr.msk.f32.vlgmr.msra.gmra.mrb[22].mxu1 %vm1015_vm3, %v2490_v58 }
 0xdcb   : > { %3668 = vmatprep.mubr.msk.f32.mxu1 %vm4078_vm2, %v4079_v14 }
 0xe92   : > { %v2485_v59 = vpop.f32.mrb[20].mxu1 }
 0xe93   : > { %v3634_v60 = vpop.f32.mrb[21].mxu1 }
 0xe9d   : > { %v2567_v61 = vpop.f32.mrb[22].mxu1 }
 0xe9e   : > { %v3641_v62 = vpop.f32.mrb[23].mxu1  ;;  %v2571_v0 = vsel %vm1686_vm5, %v2567_v61, -inf }
 0xe9f   : > { %2572 = vmax.xlane.f32.xlu0 %v2571_v0  ;;  %v2880_v62 = vld [vmem:[%s4351_s24 + $0x10] sm:$0xff]  ;;  %v2881_v0 = vld [vmem:[%s4351_s24 + $0x18] sm:$0xff] }
 0xeb5   : > { %3935 = vrot.lane.b32.xlu0 %v4521_v43, %s4084_s1 }
 0xeb9   : > { %2666 = vrot.lane.b32.xlu0 %v2485_v59, %s4092_s25  ;;  %v2783_v59 = vrot.slane %v4381_v22, %v2782_v55  ;;  %v2884_v22 = vld [vmem:[%s4351_s24 + $0x30] sm:$0xff] }
 0xf2c   : > { %v2573_v42 = vpop.xlane.xlu0 %2572 }
 0xf2d   : > { %v2574_v2 = vsub.f32 %v2567_v61, %v2573_v42  ;;  %v3787_v42 = vpack.c.bf16 %v2881_v0, %v2880_v62 }
 0xf2f   : > { %v2575_v3 = vmul.f32 1.442695, %v2574_v2  ;;  %v2882_v2 = vld [vmem:[%s4351_s24 + $0x20] sm:$0xff] }
 0xf30   : > { %v3936_v4 = vpop.permute.xlu0 %3935 }
 0xf31   : > { %3971 = vpow2.f32 %v2575_v3  ;;  %v3938_v5 = vunpack.i.h.bf16 %v3936_v4  ;;  %v3937_v6 = vunpack.i.l.bf16 %v3936_v4  ;;  %v2883_v3 = vld [vmem:[%s4351_s24 + $0x28] sm:$0xff] }
 0xf32   : > { %v3790_v4 = vpack.c.bf16 %v2883_v3, %v2882_v2 }
 0xf33   : > { %v3769_v1 = vpack.c.bf16 %v3938_v5, %v3937_v6  ;;  %v2885_v5 = vld [vmem:[%s4351_s24 + $0x38] sm:$0xff] }
 0xf34   : > { %v2667_v27 = vpop.permute.xlu0 %2666  ;;  %v3793_v6 = vpack.c.bf16 %v2885_v5, %v2884_v22 }
 0xf35   : > { %3770 = vmatpush3.bf16.msra.mxu0 %v3769_v1  ;;  %v2886_v1 = vld [vmem:[%s4351_s24 + $0x40] sm:$0xff] }
 0xf36   : > { %3771 = vmatprep.subr.bf16.mxu0 %v4077_v11 }
 0xf3b   : > { %v3972_v7 = vpop.eup %3971 }
 0xf3c   : > { %v2577_v43 = vsel %vm1686_vm5, %v3972_v7, 0.0 }
 0xf3d   : > { %2578 = vadd.xlane.f32.xlu1 %v2577_v43 }
 0xf4e   : > { %2662 = vrot.lane.b32.xlu1 %v2313_v35, %s4091_s26 }
 0xfca   : > { %v2579_v8 = vpop.xlane.xlu1 %2578 }
 0xfcb   : > { %3973 = vrcp.f32 %v2579_v8  ;;  %v2888_v8 = vld [vmem:[%s4351_s24 + $0x50] sm:$0xff] }
 0xfce   : > { %v2663_v25 = vpop.permute.xlu1 %2662 }
 0xfcf   : > { %v2673_v26 = vsel %vm1015_vm3, %v4573_v34, %v2663_v25 }
 0xfd0   : > { %v2674_v28 = vsel %vm1686_vm5, %v2673_v26, %v2667_v27 }
 0xfd5   : > { %v3974_v9 = vpop.eup %3973 }
 0xfd6   : > { %v2581_v10 = vmul.f32 %v3974_v9, %v3972_v7  ;;  %v2887_v7 = vld [vmem:[%s4351_s24 + $0x48] sm:$0xff]  ;;  %v2889_v9 = vld [vmem:[%s4351_s24 + $0x58] sm:$0xff] }
 0xfd7   : > { %v3796_v43 = vpack.c.bf16 %v2887_v7, %v2886_v1 }
 0xfd8   : > { %3647 = vmatmul.mubr.msk.f32.vlgmr.msra.gmra.mrb[14].mxu0 %vm1686_vm5, %v2581_v10  ;;  %v3799_v10 = vpack.c.bf16 %v2889_v9, %v2888_v8 }
 0xfd9   : > { %3657 = vmatprep.mubr.msk.f32.mxu0 %vm4078_vm2, %v4079_v14  ;;  %3773 = vmatpush3.bf16.msra.mxu0 %v3772_v16  ;;  %v2892_v16 = vld [vmem:[%s4351_s24 + $0x70] sm:$0xff] }
 0xfda   : > { %3774 = vmatprep.subr.bf16.mxu0 %v4077_v11 }
 0xfdd   : > { %3776 = vmatpush3.bf16.msra.mxu0 %v3775_v18  ;;  %v3805_v18 = vpack.c.bf16 %v2893_v17, %v2892_v16 }
 0xfde   : > { %3783 = vmatprep.subr.bf16.mxu0 %v4077_v11 }
0x10ab   : > { %v2657_v19 = vpop.f32.mrb[14].mxu0 }
0x10ac   : > { %2670 = vrot.lane.b32.xlu1 %v2657_v19, %s4093_s17  ;;  %v3648_v24 = vpop.f32.mrb[15].mxu0  ;;  %v3399_v19 = vld [vmem:[%s876_s8] ss:$0 sm:$0xff]  ;;  %s4852_s8 = sld [smem:[#allocation9_spill]] }
0x10b2   : > { %p3402_p1 = scmp.ne.s32.totalorder %s4852_s8, 1 }
0x10b3   : > { %s4853_s25 = sld [smem:[#allocation35_spill]] (!%p3402_p1)  ;;  %v4094_v49 = vmov (!%p3402_p1), 0.0|0.0   ;;  %vm4095_vm8 = vmmov (!%p3402_p1), 0   ;;  %s4854_s23 = sld [smem:[#allocation34_spill]] (!%p3402_p1) }
0x10b9   : > { %v3004_v48 = vld [vmem:[%s4853_s25 + $0x10] sm:$0xff] (!%p3402_p1) }
0x111e   : > { %v2671_v29 = vpop.permute.xlu1 %2670 }
0x111f   : > { %v2675_v30 = vsel %vm1688_vm6, %v2674_v28, %v2671_v29 }
0x1120   : > { %3658 = vmatmul.mubr.msk.f32.vlgmr.msra.gmra.mrb[16].mxu0 %vm902_vm1, %v2675_v30 }
0x1121   : > { %3703 = vmatprep.mubr.msk.f32.mxu0 %vm4078_vm2, %v4079_v14  ;;  %3785 = vmatpush3.bf16.msra.mxu0 %v3784_v50 }
0x1122   : > { %3786 = vmatprep.subr.bf16.mxu0 %v4077_v11 }
0x1125   : > { %3788 = vmatpush3.bf16.msra.mxu0 %v3787_v42 }
0x1126   : > { %3789 = vmatprep.subr.bf16.mxu0 %v4077_v11 }
0x1129   : > { %3791 = vmatpush3.bf16.msra.mxu0 %v3790_v4 }
0x112a   : > { %3792 = vmatprep.subr.bf16.mxu0 %v4077_v11 }
0x112d   : > { %3794 = vmatpush3.bf16.msra.mxu0 %v3793_v6 }
0x112e   : > { %3795 = vmatprep.subr.bf16.mxu0 %v4077_v11 }
0x1131   : > { %3797 = vmatpush3.bf16.msra.mxu0 %v3796_v43 }
0x1132   : > { %3798 = vmatprep.subr.bf16.mxu0 %v4077_v11 }
0x1135   : > { %3800 = vmatpush3.bf16.msra.mxu0 %v3799_v10 }
0x1136   : > { %3801 = vmatprep.subr.bf16.mxu0 %v4077_v11 }
0x1139   : > { %3803 = vmatpush3.bf16.msra.mxu0 %v3802_v15 }
0x113a   : > { %3804 = vmatprep.subr.bf16.mxu0 %v4077_v11 }
0x113d   : > { %3806 = vmatpush3.bf16.msra.mxu0 %v3805_v18 }
0x113e   : > { %3807 = vmatprep.subr.bf16.mxu0 (!%p3402_p1), %v4094_v49 }
0x11f3   : > { %v2749_v31 = vpop.f32.mrb[16].mxu0 }
0x11f4   : > { %v2753_v34 = vadd.f32 %v2749_v31, %v4480_v63  ;;  %v3659_v32 = vpop.f32.mrb[17].mxu0  ;;  %v2785_v63 = vld [vmem:[%s4341_s27] sm:$0xff] }
0x11f5   : > { %v3778_v44 = vpack.c.bf16 %v2786_v41, %v2785_v63 }
0x11f6   : > { %v4623_v35 = vadd.f32 %v3398_v33, %v2753_v34 }
0x11f7   : > { %3779 = vmatpush3.bf16.msra.mxu1 %v3778_v44 }
0x11f8   : > { %v2762_v36 = vsel %vm902_vm1, %v4623_v35, 0.0  ;;  %3780 = vmatprep.subr.bf16.mxu1 %v4077_v11 }
0x11f9   : > { %2763 = vadd.xlane.f32.xlu0 %v2762_v36 }
0x11fb   : > { %3782 = vmatpush3.bf16.msra.mxu1 %v3781_v47  ;;  %v3003_v47 = vld [vmem:[%s4853_s25 + $0x8] sm:$0xff] (!%p3402_p1) }
0x1286   : > { %v2764_v37 = vpop.xlane.xlu0 %2763 }
0x1287   : > { %v2765_v14 = vmul.f32 0.03125, %v2764_v37  ;;  %v3401_v37 = vld [vmem:[%s884_s30] ss:$0 sm:$0xff] }
0x1289   : > { %v2766_v38 = vsub.f32 %v4623_v35, %v2765_v14 }
0x128b   : > { %v2767_v39 = vmul.f32 %v2766_v38, %v2766_v38 }
0x128d   : > { %v2768_v40 = vsel %vm902_vm1, %v2767_v39, 0.0 }
0x128e   : > { %2769 = vadd.xlane.f32.xlu1 %v2768_v40 }
0x131b   : > { %v2770_v51 = vpop.xlane.xlu1 %2769 }
0x131c   : > { %v2771_v52 = vmul.f32 0.03125, %v2770_v51  ;;  %v3005_v51 = vld [vmem:[%s4853_s25 + $0x18] sm:$0xff] (!%p3402_p1) }
0x131e   : > { %v2772_v53 = vadd.f32 1e-05, %v2771_v52  ;;  %v4096_v52 = vmov (!%p3402_p1), 0.0  }
0x1320   : > { %3975 = vrsqrt.f32 %v2772_v53  ;;  %v3811_v53 = vpack.c.bf16 (!%p3402_p1), %v3005_v51, %v3004_v48 }
0x132a   : > { %v3976_v57 = vpop.eup %3975 }
0x132b   : > { %v2774_v58 = vmul.f32 %v3976_v57, %v2766_v38  ;;  %v2978_v57 = vld [vmem:[%s4854_s23] sm:$0x3] (!%p3402_p1) }
0x132d   : > { %v2779_v60 = vmul.f32 %v2778_v56, %v2774_v58  ;;  %v2995_v58 = vrot.slane (!%p3402_p1), %v2978_v57, %v919_v21 }
0x132f   : > { %v2784_v61 = vadd.f32 %v2783_v59, %v2779_v60 }
0x1331   : > { %3669 = vmatmul.mubr.msk.f32.vlgmr.msra.gmra.mrb[24].mxu1 %vm902_vm1, %v2784_v61  ;;  %v3000_v61 = vrot.slane (!%p3402_p1), %v2978_v57, %v924_v23 }
0x1404   : > { %v2865_v24 = vpop.f32.mrb[24].mxu1 }
0x1405   : > { %v2866_v25 = vadd.f32 %v3399_v19, %v2865_v24  ;;  %v3670_v26 = vpop.f32.mrb[25].mxu1 }
0x1407   : > { %v2870_v27 = vmul.f32 0.044715, %v2866_v25  ;;  %v2869_v34 = vmul.f32 0.5, %v2866_v25 }
0x1409   : > { %v2871_v28 = vmul.f32 %v2870_v27, %v2866_v25 }
0x140b   : > { %v2872_v29 = vmul.f32 %v2871_v28, %v2866_v25 }
0x140d   : > { %v2873_v30 = vadd.f32 %v2872_v29, %v2866_v25 }
0x140f   : > { %v2874_v31 = vmul.f32 0.7978846, %v2873_v30 }
0x1411   : > { %3977 = vtanh.f32 %v2874_v31 }
0x141b   : > { %v3978_v33 = vpop.eup %3977 }
0x141c   : > { %v2876_v32 = vadd.f32 1.0, %v3978_v33 }
0x141e   : > { %v2877_v11 = vmul.f32 %v2876_v32, %v2869_v34 }
0x1420   : > { %3704 = vmatmul.mubr.f32.vlgmr.msra.gmra.mrb[18].mxu0 %v2877_v11 }
0x1421   : > { %3714 = vmatprep.mubr.msk.f32.mxu0 (!%p3402_p1), %vm4095_vm8, %v4096_v52 }
0x14f2   : > { %2977 = sbr.rel (%p3402_p1) target bundleno = 5894 (0x1706), region = 104 }
0x14f3   : > { %v2960_v36 = vpop.f32.mrb[18].mxu0 }
0x14f4   : > { %v2964_v14 = vadd.f32 %v2960_v36, %v4623_v35  ;;  %v3705_v38 = vpop.f32.mrb[19].mxu0  ;;  %v3002_v35 = vld [vmem:[%s4853_s25] sm:$0xff] (!%p3402_p1) }
0x14f5   : > { %v3808_v50 = vpack.c.bf16 (!%p3402_p1), %v3003_v47, %v3002_v35 }
0x14f6   : > { %v2972_v39 = vadd.f32 %v3401_v37, %v2964_v14 }
0x14f7   : > { %3809 = vmatpush3.bf16.msra.mxu0 (!%p3402_p1), %v3808_v50 }
0x14f8   : > { %2973 = vst.msk [vmem:[#allocation2] sm:$0xff] %vm902_vm1, %v2972_v39  ;;  %v2979_v40 = vsel (!%p3402_p1), %vm902_vm1, %v2972_v39, 0.0  ;;  %3810 = vmatprep.subr.bf16.mxu0 (!%p3402_p1), %v4094_v49 }
0x14f9   : > { %2980 = vadd.xlane.f32.xlu0 %v2979_v40 }
0x14fb   : > { %3812 = vmatpush3.bf16.msra.mxu0 %v3811_v53 }
0x1586   : > { %v2981_v63 = vpop.xlane.xlu0 %2980 }
0x1587   : > { %v2982_v41 = vmul.f32 0.03125, %v2981_v63 }
0x1589   : > { %v2983_v44 = vsub.f32 %v2972_v39, %v2982_v41 }
0x158b   : > { %v2984_v45 = vmul.f32 %v2983_v44, %v2983_v44 }
0x158d   : > { %v2985_v46 = vsel %vm902_vm1, %v2984_v45, 0.0 }
0x158e   : > { %2986 = vadd.xlane.f32.xlu0 %v2985_v46 }
0x161b   : > { %v2987_v54 = vpop.xlane.xlu0 %2986 }
0x161c   : > { %v2988_v55 = vmul.f32 0.03125, %v2987_v54 }
0x161e   : > { %v2989_v56 = vadd.f32 1e-05, %v2988_v55 }
0x1620   : > { %3979 = vrsqrt.f32 %v2989_v56 }
0x162a   : > { %v3980_v59 = vpop.eup %3979 }
0x162b   : > { %v2991_v60 = vmul.f32 %v3980_v59, %v2983_v44 }
0x162d   : > { %v2996_v62 = vmul.f32 %v2995_v58, %v2991_v60 }
0x162f   : > { %v3001_v0 = vadd.f32 %v3000_v61, %v2996_v62 }
0x1631   : > { %3715 = vmatmul.mubr.msk.f32.vlgmr.msra.gmra.mrb[0].mxu0 %vm902_vm1, %v3001_v0 }
0x1704   : > { %v3075_v42 = vpop.f32.mrb[0].mxu0 }
0x1705   : > { %3079 = vst [vmem:[%s815_s21] sm:$0xff] %v3075_v42  ;;  %v3716_v2 = vpop.f32.mrb[1].mxu0 }
0x1706 PF: > { %s4855_s29 = sld [smem:[#allocation10_spill]]  ;;  %s4856_s5 = sld [smem:[#allocation7_spill]] }
0x1707   : > { %s4858_s27 = sld [smem:[#allocation36_spill]]  ;;  %s3094_s2 = sshll.u32 %s815_s21, 4  ;;  %s3095_s2 = int_to_ptr.vmem [resolvable:$true] %s3094_s2 }
0x1708   : > { %s3981_s26 = scalar_lea.vmem %s3095_s2, 128  ;;  %s4097_s8 = smov [#allocation3]  }
0x1709   : > { %p3982_p2 = scmp.ne.s32.totalorder %s3095_s2, %s3981_s26  ;;  %s3985_s0 = sshll.u32 %s4097_s8, 4  ;;  %s3986_s0 = int_to_ptr.vmem [resolvable:$false] %s3985_s0 }
0x170a   : > { %s3987_s30 = scalar_lea.vmem %s3986_s0, 256  ;;  %p3988_p6 = scmp.lt.s32.totalorder %s3095_s2, %s3986_s0 }
0x170b   : > { %p3983_p4 = pnand %p3982_p2, %p4247_p3  ;;  %p3989_p7 = scmp.lt.s32.totalorder %s3987_s30, %s3981_s26 }
0x170c   : > { %s3405_s11 = sshll.u32 %s4855_s29, 7  ;;  %s4859_s24 = sand.u32 1, %s4856_s5  }
0x170d   : > { %s4703_s1 = scalar_lea.hbm %s4858_s27, %s3405_s11  ;;  %s3081_s18 = scalar_lea.sflag [#allocation4], %s4859_s24 }
0x170e   : > { %p3984_p5 = pneg %p3983_p4  ;;  %p3990_p8 = por %p3989_p7, %p3988_p6 }
0x1710   : > { %p3991_p10 = pnand %p3990_p8, %p3984_p5 }
0x1712   : > { %3994 = shalt.err (!%p3991_p10)
}
0x1713   : > { %s3995_s22 = scalar_lea.hbm %s4703_s1, 128  ;;  %s3999_s7 = scalar_lea.hbm %s4858_s27, 256 }
0x1714   : > { %p3996_p11 = scmp.ne.s32.totalorder %s4703_s1, %s3995_s22  ;;  %p4000_p0 = scmp.lt.u32.totalorder %s4703_s1, %s4858_s27 }
0x1715   : > { %p4001_p1 = scmp.lt.u32.totalorder %s3999_s7, %s3995_s22  ;;  %p4003_p4 = scmp.lt.u32.totalorder %s3995_s22, %s4703_s1 }
0x1716   : > { %p3997_p12 = pnand %p3996_p11, %p4247_p3 }
0x1717   : > { %p4002_p2 = por %p4001_p1, %p4000_p0 }
0x1718   : > { %p3998_p13 = pneg %p3997_p12 }
0x1719   : > { %p4004_p5 = por %p4003_p4, %p4002_p2 }
0x171b   : > { %p4005_p6 = pnand %p4004_p5, %p3998_p13 }
0x171d   : > { %4008 = shalt.err (!%p4005_p6)
}
0x171e   : > { %3813 = dma.vmem_to_hbm [thread:$0]  (%p4247_p3), %s3095_s2, 128, %s4703_s1, %s3081_s18  }
0x171f PF: > { %s4860_s15 = sld [smem:[#allocation13_spill]]  ;;  %s4861_s14 = sld [smem:[#allocation6_spill]] }
0x1725   : > { %p3819_p7 = scmp.ge.s32.totalorder %s4860_s15, 2  ;;  %s3106_s3 = sand.u32 1, %s4861_s14  }
0x1726   : > { %s3107_s23 = scalar_lea.sflag [#allocation4], %s3106_s3 }
0x1727   : > { %p3816_p8 = pnand %p3819_p7, %p4257_p9 }
0x1729   : > { %4042 = dma.done.wait (!%p3816_p8), %s3107_s23, 128  }
0x172a   : > { %4044 = vsyncadd (!%p3816_p8), %s3107_s23, 4294967168  ;;  %s32_s23 = sadd.s32 1, %s4860_s15   ;;  %s4863_s0 = sld [smem:[#allocation7_spill]] }
0x172b   : > { %p29_p10 = scmp.ge.s32.totalorder %s32_s23, 6   ;;  %s4864_s30 = sld [smem:[#allocation8_spill]] }
0x172c   : > { %s4865_s20 = sld [smem:[#allocation18_spill]]  ;;  %s4866_s21 = sld [smem:[#allocation11_spill]] }
0x172d   : > { %s4867_s1 = sld [smem:[#allocation12_spill]]  ;;  %s4868_s22 = sld [smem:[#allocation14_spill]] }
0x172e   : > { %s4869_s2 = sld [smem:[#allocation16_spill]]  ;;  %31 = sbr.rel (!%p29_p10) target bundleno = 22 (0x16), region = 187 }
0x1735   :  { %3112 = vsyncpa [#allocation4], 1 }
0x1736   :  { %3114 = vsyncpa [#allocation4 + $0x1], 1 }

</bundles_post_ra>
